<compile_context>
chip_gen: v6e
topology: v6e:2x2x1
jax: 0.10.0
libtpu: 0.0.40
codegen_flags: <defaults>
</compile_context>

<pallas_src>
import functools

import jax
import jax.numpy as jnp
from jax import lax
from jax.experimental import pallas as pl
from jax.experimental.pallas import tpu as pltpu

# ----------------------------------------------------------------------------- config (small demo)
LATENT_DIM = 32      # input feature size of the LSTM
HIDDEN = 32          # hidden_size (4*HIDDEN = 128 -> lane-dense gate dimension)
NUM_LAYERS = 2       # lstm_layers
BIDIRECTIONAL = True
BATCH = 2
SEQ = 8


# ----------------------------------------------------------------------------- GEMM kernel
def _gemm_bias_kernel(a_ref, b_ref, bias_ref, o_ref, acc_ref):
    """(tm, tk) @ (tk, tn) bf16->f32 accumulation over the K grid axis, fused bias epilogue."""
    @pl.when(pl.program_id(2) == 0)
    def _():
        acc_ref[...] = jnp.zeros_like(acc_ref)

    acc_ref[...] += jnp.dot(a_ref[...], b_ref[...],
                            preferred_element_type=jnp.float32)

    @pl.when(pl.program_id(2) == pl.num_programs(2) - 1)
    def _():
        o_ref[...] = (acc_ref[...] + bias_ref[...]).astype(o_ref.dtype)


def _pick_tile(dim, unit, cap):
    """Largest tile <= cap that is a multiple of `unit` and divides `dim`; else the full dim."""
    if dim <= cap:
        return dim
    t = (cap // unit) * unit
    while t >= unit:
        if dim % t == 0:
            return t
        t -= unit
    return dim   # fallback: full-extent block (valid; only used when it still fits VMEM)


def gemm_bias(a, w_t, bias):
    """a:(M,K) bf16  @  w_t:(K,N) bf16  + bias:(1,N) f32  -> (M,N) f32, tiled & pipelined."""
    M, K = a.shape
    N = w_t.shape[1]
    Mp = -(-M // 16) * 16                      # bf16 sublane packing -> multiple of 16
    if Mp != M:
        a = jnp.pad(a, ((0, Mp - M), (0, 0)))

    tm = _pick_tile(Mp, 16, 512)
    tn = _pick_tile(N, 128, 512)
    tk = _pick_tile(K, 128, 512)
    grid = (Mp // tm, N // tn, K // tk)

    out = pl.pallas_call(
        _gemm_bias_kernel,
        out_shape=jax.ShapeDtypeStruct((Mp, N), jnp.float32),
        grid_spec=pltpu.PrefetchScalarGridSpec(
            num_scalar_prefetch=0,
            grid=grid,
            in_specs=[
                pl.BlockSpec((tm, tk), lambda i, j, k: (i, k)),
                pl.BlockSpec((tk, tn), lambda i, j, k: (k, j)),
                pl.BlockSpec((1, tn), lambda i, j, k: (0, j)),
            ],
            out_specs=pl.BlockSpec((tm, tn), lambda i, j, k: (i, j)),
            scratch_shapes=[pltpu.VMEM((tm, tn), jnp.float32)],
        ),
        compiler_params=pltpu.CompilerParams(
            dimension_semantics=("parallel", "parallel", "arbitrary")),
        cost_estimate=pl.CostEstimate(
            flops=2 * Mp * N * K,
            transcendentals=0,
            bytes_accessed=2 * Mp * K + 2 * K * N + 4 * Mp * N + 4 * N),
    )(a, w_t, bias)
    return out[:M] if Mp != M else out


# ----------------------------------------------------------------------------- recurrence kernel
def _sigmoid(x):
    return 1.0 / (1.0 + jnp.exp(-x))     # exact (EUP exp + VPU divide); no approx drift


def _lstm_seq_kernel(gin_ref, whh_ref, out_ref, fwd_scr, bwd_scr, *,
                     hidden, num_dir, seq_len, batch):
    """Whole-sequence LSTM recurrence for one layer, both directions fused.

    gin_ref: (T, B, nd*4H) f32   precomputed input-side gates (incl. both biases), VMEM-resident
    whh_ref: (nd*H, nd*4H) bf16  block-diagonal W_hh^T (fwd | bwd)
    out_ref: (T, B, nd*H)  f32   written once at the end (single HBM DMA)
    """
    H = hidden
    nd = num_dir
    w = whh_ref[...]                       # hoisted: stays resident across the unrolled loop

    def cell(gates, c_prev):
        i = _sigmoid(gates[:, 0 * H:1 * H])
        f = _sigmoid(gates[:, 1 * H:2 * H])
        g = jnp.tanh(gates[:, 2 * H:3 * H])
        o = _sigmoid(gates[:, 3 * H:4 * H])
        c_new = f * c_prev + i * g
        h_new = o * jnp.tanh(c_new)
        return h_new, c_new

    def step(s, carry):
        h, c = carry                                                 # (B, nd*H) f32
        # one block-diagonal dot covers both directions: (B, nd*H) @ (nd*H, nd*4H)
        hh = jnp.dot(h.astype(jnp.bfloat16), w,
                     preferred_element_type=jnp.float32)             # (B, nd*4H)

        # forward direction: time index s
        g_f = gin_ref[s][:, 0:4 * H] + hh[:, 0:4 * H]
        h_f, c_f = cell(g_f, c[:, 0:H])
        fwd_scr[s] = h_f

        if nd == 2:
            # backward direction: time index T-1-s (reverse scan, written back in place)
            sr = seq_len - 1 - s
            g_b = gin_ref[sr][:, 4 * H:8 * H] + hh[:, 4 * H:8 * H]
            h_b, c_b = cell(g_b, c[:, H:2 * H])
            bwd_scr[sr] = h_b
            return (jnp.concatenate([h_f, h_b], axis=-1),
                    jnp.concatenate([c_f, c_b], axis=-1))
        return (h_f, c_f)

    h0 = jnp.zeros((batch, nd * H), jnp.float32)   # hidden_state=None -> zero init
    c0 = jnp.zeros((batch, nd * H), jnp.float32)
    lax.fori_loop(0, seq_len, step, (h0, c0), unroll=True)

    if nd == 2:
        out_ref[...] = jnp.concatenate([fwd_scr[...], bwd_scr[...]], axis=-1)
    else:
        out_ref[...] = fwd_scr[...]


def lstm_scan(gin, w_hh_blk, *, hidden, num_dir):
    """Run the full-time recurrence for one layer (both directions) in one pallas_call."""
    T, B, G = gin.shape
    kern = functools.partial(_lstm_seq_kernel, hidden=hidden, num_dir=num_dir,
                             seq_len=T, batch=B)
    return pl.pallas_call(
        kern,
        out_shape=jax.ShapeDtypeStruct((T, B, num_dir * hidden), jnp.float32),
        grid_spec=pltpu.PrefetchScalarGridSpec(
            num_scalar_prefetch=0,
            grid=(1,),                                            # single grid point
            in_specs=[
                pl.BlockSpec((T, B, G), lambda i: (0, 0, 0)),     # whole gin resident in VMEM
                pl.BlockSpec((num_dir * hidden, G), lambda i: (0, 0)),   # W_hh^T resident
            ],
            out_specs=pl.BlockSpec((T, B, num_dir * hidden), lambda i: (0, 0, 0)),
            scratch_shapes=[pltpu.VMEM((T, B, hidden), jnp.float32),   # fwd hidden states
                            pltpu.VMEM((T, B, hidden), jnp.float32)],  # bwd hidden states
        ),
        compiler_params=pltpu.CompilerParams(
            dimension_semantics=("arbitrary",)),
    )(gin, w_hh_blk)


# ----------------------------------------------------------------------------- forward
def lstm_forward(x, params, *, hidden, num_dir):
    """x: (B, T, latent_dim), batch_first.  Returns (B, T, num_dir * hidden)."""
    B, T, _ = x.shape
    inp = jnp.transpose(x, (1, 0, 2))          # (T, B, F): transpose ONCE, keep this layout
    for w_ih_cat, w_hh_blk, bias_cat in params:
        d_in = inp.shape[-1]
        a = inp.astype(jnp.bfloat16).reshape(T * B, d_in)          # cast once per layer
        gin = gemm_bias(a, w_ih_cat, bias_cat)                     # (T*B, nd*4H) f32
        gin = gin.reshape(T, B, num_dir * 4 * hidden)              # free reshape
        inp = lstm_scan(gin, w_hh_blk, hidden=hidden, num_dir=num_dir)   # (T, B, nd*H)
    return jnp.transpose(inp, (1, 0, 2))       # back to batch_first ONCE


# ----------------------------------------------------------------------------- parameters
def build_params(key, input_size, hidden, num_layers, bidirectional):
    """Synthetic, deterministic weights following PyTorch's LSTM layout & init (i,f,g,o)."""
    nd = 2 if bidirectional else 1
    bound = 1.0 / float(hidden) ** 0.5
    params = []
    for layer in range(num_layers):
        d_in = input_size if layer == 0 else hidden * nd
        w_ih_dirs, w_hh_dirs, bias_dirs = [], [], []
        for _ in range(nd):
            key, k1, k2, k3, k4 = jax.random.split(key, 5)
            w_ih = jax.random.uniform(k1, (4 * hidden, d_in), jnp.float32, -bound, bound)
            w_hh = jax.random.uniform(k2, (4 * hidden, hidden), jnp.float32, -bound, bound)
            b_ih = jax.random.uniform(k3, (4 * hidden,), jnp.float32, -bound, bound)
            b_hh = jax.random.uniform(k4, (4 * hidden,), jnp.float32, -bound, bound)
            w_ih_dirs.append(w_ih.T)                 # (d_in, 4H)
            w_hh_dirs.append(w_hh.T)                 # (H, 4H)
            bias_dirs.append(b_ih + b_hh)            # folded bias
        # both directions' input projections fused along N -> one GEMM per layer
        w_ih_cat = jnp.concatenate(w_ih_dirs, axis=1).astype(jnp.bfloat16)    # (d_in, nd*4H)
        bias_cat = jnp.concatenate(bias_dirs).reshape(1, nd * 4 * hidden)     # f32
        # block-diagonal W_hh^T so one dot per step covers both directions
        if nd == 2:
            z = jnp.zeros((hidden, 4 * hidden), jnp.float32)
            w_hh_blk = jnp.concatenate(
                [jnp.concatenate([w_hh_dirs[0], z], axis=1),
                 jnp.concatenate([z, w_hh_dirs[1]], axis=1)],
                axis=0).astype(jnp.bfloat16)                                  # (2H, 8H)
        else:
            w_hh_blk = w_hh_dirs[0].astype(jnp.bfloat16)                      # (H, 4H)
        params.append((w_ih_cat, w_hh_blk, bias_cat))
    return params


# ----------------------------------------------------------------------------- pure-JAX reference
def lstm_reference(x, params, *, hidden, num_dir):
    """XLA reference using the same bf16-quantized weights/activations as the kernels."""
    H = hidden
    B, T, _ = x.shape
    inp = x
    for w_ih_cat, w_hh_blk, bias_cat in params:
        w_ih = w_ih_cat.astype(jnp.float32)
        w_hh = w_hh_blk.astype(jnp.float32)
        a = inp.astype(jnp.bfloat16).astype(jnp.float32)
        gin = jnp.einsum('btk,kn->btn', a, w_ih) + bias_cat[0]
        outs = []
        for d in range(num_dir):
            wd = w_hh[d * H:(d + 1) * H, d * 4 * H:(d + 1) * 4 * H]
            g = gin[:, :, d * 4 * H:(d + 1) * 4 * H]
            h = jnp.zeros((B, H), jnp.float32)
            c = jnp.zeros((B, H), jnp.float32)
            hs = [None] * T
            order = range(T) if d == 0 else range(T - 1, -1, -1)
            for t in order:
                gates = g[:, t] + h.astype(jnp.bfloat16).astype(jnp.float32) @ wd
                i = jax.nn.sigmoid(gates[:, 0:H])
                f = jax.nn.sigmoid(gates[:, H:2 * H])
                gg = jnp.tanh(gates[:, 2 * H:3 * H])
                o = jax.nn.sigmoid(gates[:, 3 * H:4 * H])
                c = f * c + i * gg
                h = o * jnp.tanh(c)
                hs[t] = h
            outs.append(jnp.stack(hs, axis=1))                    # (B, T, H)
        inp = jnp.concatenate(outs, axis=-1) if num_dir > 1 else outs[0]
    return inp


if __name__ == "__main__":
    key = jax.random.PRNGKey(0)
    kx, kp = jax.random.split(key)
    x = jax.random.normal(kx, (BATCH, SEQ, LATENT_DIM), jnp.float32)   # (batch, seq, latent)
    num_dir = 2 if BIDIRECTIONAL else 1
    params = build_params(kp, LATENT_DIM, HIDDEN, NUM_LAYERS, BIDIRECTIONAL)

    fwd = jax.jit(functools.partial(lstm_forward, hidden=HIDDEN, num_dir=num_dir))
    out = jax.block_until_ready(fwd(x, params))

    assert out.shape == (BATCH, SEQ, num_dir * HIDDEN), out.shape
    assert bool(jnp.all(jnp.isfinite(out)))

    ref = lstm_reference(x, params, hidden=HIDDEN, num_dir=num_dir)
    max_err = float(jnp.max(jnp.abs(out - ref)))
    assert max_err < 2e-2, f"max abs error vs reference: {max_err}"

    print("KERNEL_OK")
</pallas_src>

<mosaic_0001>
module attributes {stable_mosaic.version = 11 : i64} {
  func.func @_gemm_bias_kernel(%arg0: i32, %arg1: i32, %arg2: i32, %arg3: memref<16x32xbf16, #tpu.memory_space<vmem>>, %arg4: memref<32x256xbf16, #tpu.memory_space<vmem>>, %arg5: memref<1x256xf32, #tpu.memory_space<vmem>>, %arg6: memref<16x256xf32, #tpu.memory_space<vmem>>, %arg7: memref<16x256xf32, #tpu.memory_space<vmem>>) attributes {dimension_semantics = [#tpu.dimension_semantics<parallel>, #tpu.dimension_semantics<parallel>, #tpu.dimension_semantics<arbitrary>], iteration_bounds = array<i64: 1, 1, 1>, scalar_prefetch = 0 : i64, scratch_operands = 1 : i64, tpu.core_type = #tpu.core_type<tc>, window_params = [{transform_indices = @transform_0, window_bounds = array<i64: 16, 32>}, {transform_indices = @transform_1, window_bounds = array<i64: 32, 256>}, {transform_indices = @transform_2, window_bounds = array<i64: 1, 256>}, {transform_indices = @transform_3, window_bounds = array<i64: 16, 256>}]} {
    %c0_i32 = arith.constant 0 : i32
    %0 = arith.cmpi eq, %arg2, %c0_i32 : i32
    %1 = arith.extui %0 : i1 to i32
    %c0_i32_0 = arith.constant 0 : i32
    %2 = arith.cmpi ne, %1, %c0_i32_0 : i32
    scf.if %2 {
      %cst_10 = arith.constant 0.000000e+00 : f32
      %12 = vector.broadcast %cst_10 : f32 to vector<16x256xf32>
      %c0_11 = arith.constant 0 : index
      %c0_12 = arith.constant 0 : index
      %13 = vector.load %arg7[%c0_11, %c0_12] : memref<16x256xf32, #tpu.memory_space<vmem>>, vector<16x256xf32>
      tpu.vector_store %arg7[%c0_11, %c0_12], %12 {strides = array<i32>} : memref<16x256xf32, #tpu.memory_space<vmem>>, vector<16x256xf32>,
    } else {
    }
    %c0 = arith.constant 0 : index
    %c0_1 = arith.constant 0 : index
    %3 = vector.load %arg7[%c0, %c0_1] : memref<16x256xf32, #tpu.memory_space<vmem>>, vector<16x256xf32>
    %c0_2 = arith.constant 0 : index
    %c0_3 = arith.constant 0 : index
    %4 = vector.load %arg3[%c0_2, %c0_3] : memref<16x32xbf16, #tpu.memory_space<vmem>>, vector<16x32xbf16>
    %c0_4 = arith.constant 0 : index
    %c0_5 = arith.constant 0 : index
    %5 = vector.load %arg4[%c0_4, %c0_5] : memref<32x256xbf16, #tpu.memory_space<vmem>>, vector<32x256xbf16>
    %cst = arith.constant dense<0.000000e+00> : vector<16x256xf32>
    %6 = tpu.matmul %4, %5, %cst {dimension_numbers = #tpu.dot_dimension_numbers<[1], [0], [0], [1], [0, 0, 1, 1], [], []>} : vector<16x32xbf16>, vector<32x256xbf16>, vector<16x256xf32> -> vector<16x256xf32>
    %7 = arith.addf %3, %6 : vector<16x256xf32>
    %c0_6 = arith.constant 0 : index
    %c0_7 = arith.constant 0 : index
    %8 = vector.load %arg7[%c0_6, %c0_7] : memref<16x256xf32, #tpu.memory_space<vmem>>, vector<16x256xf32>
    tpu.vector_store %arg7[%c0_6, %c0_7], %7 {strides = array<i32>} : memref<16x256xf32, #tpu.memory_space<vmem>>, vector<16x256xf32>,
    %c0_i32_8 = arith.constant 0 : i32
    %9 = arith.cmpi eq, %arg2, %c0_i32_8 : i32
    %10 = arith.extui %9 : i1 to i32
    %c0_i32_9 = arith.constant 0 : i32
    %11 = arith.cmpi ne, %10, %c0_i32_9 : i32
    scf.if %11 {
      %c0_10 = arith.constant 0 : index
      %c0_11 = arith.constant 0 : index
      %12 = vector.load %arg7[%c0_10, %c0_11] : memref<16x256xf32, #tpu.memory_space<vmem>>, vector<16x256xf32>
      %c0_12 = arith.constant 0 : index
      %c0_13 = arith.constant 0 : index
      %13 = vector.load %arg5[%c0_12, %c0_13] : memref<1x256xf32, #tpu.memory_space<vmem>>, vector<1x256xf32>
      %14 = vector.broadcast %13 : vector<1x256xf32> to vector<16x256xf32>
      %15 = arith.addf %12, %14 : vector<16x256xf32>
      %c0_14 = arith.constant 0 : index
      %c0_15 = arith.constant 0 : index
      %16 = vector.load %arg6[%c0_14, %c0_15] : memref<16x256xf32, #tpu.memory_space<vmem>>, vector<16x256xf32>
      tpu.vector_store %arg6[%c0_14, %c0_15], %15 {strides = array<i32>} : memref<16x256xf32, #tpu.memory_space<vmem>>, vector<16x256xf32>,
    } else {
    }
    return
  }
  func.func @transform_0(%arg0: i32, %arg1: i32, %arg2: i32) -> (i32, i32) {
    %c0_i32 = arith.constant 0 : i32
    return %arg0, %arg2 : i32, i32
  }
  func.func @transform_1(%arg0: i32, %arg1: i32, %arg2: i32) -> (i32, i32) {
    %c0_i32 = arith.constant 0 : i32
    return %arg2, %arg1 : i32, i32
  }
  func.func @transform_2(%arg0: i32, %arg1: i32, %arg2: i32) -> (i32, i32) {
    %c0_i32 = arith.constant 0 : i32
    %c0_i32_0 = arith.constant 0 : i32
    return %c0_i32, %arg1 : i32, i32
  }
  func.func @transform_3(%arg0: i32, %arg1: i32, %arg2: i32) -> (i32, i32) {
    %c0_i32 = arith.constant 0 : i32
    return %arg0, %arg1 : i32, i32
  }
}

module attributes {stable_mosaic.version = 11 : i64} {
  func.func @_gemm_bias_kernel(%arg0: i32, %arg1: i32, %arg2: i32, %arg3: memref<16x64xbf16, #tpu.memory_space<vmem>>, %arg4: memref<64x256xbf16, #tpu.memory_space<vmem>>, %arg5: memref<1x256xf32, #tpu.memory_space<vmem>>, %arg6: memref<16x256xf32, #tpu.memory_space<vmem>>, %arg7: memref<16x256xf32, #tpu.memory_space<vmem>>) attributes {dimension_semantics = [#tpu.dimension_semantics<parallel>, #tpu.dimension_semantics<parallel>, #tpu.dimension_semantics<arbitrary>], iteration_bounds = array<i64: 1, 1, 1>, scalar_prefetch = 0 : i64, scratch_operands = 1 : i64, tpu.core_type = #tpu.core_type<tc>, window_params = [{transform_indices = @transform_0, window_bounds = array<i64: 16, 64>}, {transform_indices = @transform_1, window_bounds = array<i64: 64, 256>}, {transform_indices = @transform_2, window_bounds = array<i64: 1, 256>}, {transform_indices = @transform_3, window_bounds = array<i64: 16, 256>}]} {
    %c0_i32 = arith.constant 0 : i32
    %0 = arith.cmpi eq, %arg2, %c0_i32 : i32
    %1 = arith.extui %0 : i1 to i32
    %c0_i32_0 = arith.constant 0 : i32
    %2 = arith.cmpi ne, %1, %c0_i32_0 : i32
    scf.if %2 {
      %cst_10 = arith.constant 0.000000e+00 : f32
      %12 = vector.broadcast %cst_10 : f32 to vector<16x256xf32>
      %c0_11 = arith.constant 0 : index
      %c0_12 = arith.constant 0 : index
      %13 = vector.load %arg7[%c0_11, %c0_12] : memref<16x256xf32, #tpu.memory_space<vmem>>, vector<16x256xf32>
      tpu.vector_store %arg7[%c0_11, %c0_12], %12 {strides = array<i32>} : memref<16x256xf32, #tpu.memory_space<vmem>>, vector<16x256xf32>,
    } else {
    }
    %c0 = arith.constant 0 : index
    %c0_1 = arith.constant 0 : index
    %3 = vector.load %arg7[%c0, %c0_1] : memref<16x256xf32, #tpu.memory_space<vmem>>, vector<16x256xf32>
    %c0_2 = arith.constant 0 : index
    %c0_3 = arith.constant 0 : index
    %4 = vector.load %arg3[%c0_2, %c0_3] : memref<16x64xbf16, #tpu.memory_space<vmem>>, vector<16x64xbf16>
    %c0_4 = arith.constant 0 : index
    %c0_5 = arith.constant 0 : index
    %5 = vector.load %arg4[%c0_4, %c0_5] : memref<64x256xbf16, #tpu.memory_space<vmem>>, vector<64x256xbf16>
    %cst = arith.constant dense<0.000000e+00> : vector<16x256xf32>
    %6 = tpu.matmul %4, %5, %cst {dimension_numbers = #tpu.dot_dimension_numbers<[1], [0], [0], [1], [0, 0, 1, 1], [], []>} : vector<16x64xbf16>, vector<64x256xbf16>, vector<16x256xf32> -> vector<16x256xf32>
    %7 = arith.addf %3, %6 : vector<16x256xf32>
    %c0_6 = arith.constant 0 : index
    %c0_7 = arith.constant 0 : index
    %8 = vector.load %arg7[%c0_6, %c0_7] : memref<16x256xf32, #tpu.memory_space<vmem>>, vector<16x256xf32>
    tpu.vector_store %arg7[%c0_6, %c0_7], %7 {strides = array<i32>} : memref<16x256xf32, #tpu.memory_space<vmem>>, vector<16x256xf32>,
    %c0_i32_8 = arith.constant 0 : i32
    %9 = arith.cmpi eq, %arg2, %c0_i32_8 : i32
    %10 = arith.extui %9 : i1 to i32
    %c0_i32_9 = arith.constant 0 : i32
    %11 = arith.cmpi ne, %10, %c0_i32_9 : i32
    scf.if %11 {
      %c0_10 = arith.constant 0 : index
      %c0_11 = arith.constant 0 : index
      %12 = vector.load %arg7[%c0_10, %c0_11] : memref<16x256xf32, #tpu.memory_space<vmem>>, vector<16x256xf32>
      %c0_12 = arith.constant 0 : index
      %c0_13 = arith.constant 0 : index
      %13 = vector.load %arg5[%c0_12, %c0_13] : memref<1x256xf32, #tpu.memory_space<vmem>>, vector<1x256xf32>
      %14 = vector.broadcast %13 : vector<1x256xf32> to vector<16x256xf32>
      %15 = arith.addf %12, %14 : vector<16x256xf32>
      %c0_14 = arith.constant 0 : index
      %c0_15 = arith.constant 0 : index
      %16 = vector.load %arg6[%c0_14, %c0_15] : memref<16x256xf32, #tpu.memory_space<vmem>>, vector<16x256xf32>
      tpu.vector_store %arg6[%c0_14, %c0_15], %15 {strides = array<i32>} : memref<16x256xf32, #tpu.memory_space<vmem>>, vector<16x256xf32>,
    } else {
    }
    return
  }
  func.func @transform_0(%arg0: i32, %arg1: i32, %arg2: i32) -> (i32, i32) {
    %c0_i32 = arith.constant 0 : i32
    return %arg0, %arg2 : i32, i32
  }
  func.func @transform_1(%arg0: i32, %arg1: i32, %arg2: i32) -> (i32, i32) {
    %c0_i32 = arith.constant 0 : i32
    return %arg2, %arg1 : i32, i32
  }
  func.func @transform_2(%arg0: i32, %arg1: i32, %arg2: i32) -> (i32, i32) {
    %c0_i32 = arith.constant 0 : i32
    %c0_i32_0 = arith.constant 0 : i32
    return %c0_i32, %arg1 : i32, i32
  }
  func.func @transform_3(%arg0: i32, %arg1: i32, %arg2: i32) -> (i32, i32) {
    %c0_i32 = arith.constant 0 : i32
    return %arg0, %arg1 : i32, i32
  }
}

module attributes {stable_mosaic.version = 11 : i64} {
  func.func @_lstm_seq_kernel(%arg0: i32, %arg1: memref<8x2x256xf32, #tpu.memory_space<vmem>>, %arg2: memref<64x256xbf16, #tpu.memory_space<vmem>>, %arg3: memref<8x2x64xf32, #tpu.memory_space<vmem>>, %arg4: memref<8x2x32xf32, #tpu.memory_space<vmem>>, %arg5: memref<8x2x32xf32, #tpu.memory_space<vmem>>) attributes {dimension_semantics = [#tpu.dimension_semantics<arbitrary>], iteration_bounds = array<i64: 1>, scalar_prefetch = 0 : i64, scratch_operands = 2 : i64, tpu.core_type = #tpu.core_type<tc>, window_params = [{pipeline_mode = #tpu.pipeline_mode<synchronous>, transform_indices = @transform_0, window_bounds = array<i64: 8, 2, 256>}, {pipeline_mode = #tpu.pipeline_mode<synchronous>, transform_indices = @transform_1, window_bounds = array<i64: 64, 256>}, {pipeline_mode = #tpu.pipeline_mode<synchronous>, transform_indices = @transform_2, window_bounds = array<i64: 8, 2, 64>}]} {
    %c0 = arith.constant 0 : index
    %c0_0 = arith.constant 0 : index
    %0 = vector.load %arg2[%c0, %c0_0] : memref<64x256xbf16, #tpu.memory_space<vmem>>, vector<64x256xbf16>
    %cst = arith.constant 0.000000e+00 : f32
    %1 = vector.broadcast %cst : f32 to vector<2x64xf32>
    %cst_1 = arith.constant 0.000000e+00 : f32
    %2 = vector.broadcast %cst_1 : f32 to vector<2x64xf32>
    %c0_i32 = arith.constant 0 : i32
    %3 = arith.truncf %1 : vector<2x64xf32> to vector<2x64xbf16>
    %cst_2 = arith.constant dense<0.000000e+00> : vector<2x256xf32>
    %4 = tpu.matmul %3, %0, %cst_2 {dimension_numbers = #tpu.dot_dimension_numbers<[1], [0], [0], [1], [0, 0, 1, 1], [], []>} : vector<2x64xbf16>, vector<64x256xbf16>, vector<2x256xf32> -> vector<2x256xf32>
    %5 = arith.index_cast %c0_i32 : i32 to index
    %c0_3 = arith.constant 0 : index
    %c0_4 = arith.constant 0 : index
    %6 = vector.load %arg1[%5, %c0_3, %c0_4] : memref<8x2x256xf32, #tpu.memory_space<vmem>>, vector<1x2x256xf32>
    %7 = vector.shape_cast %6 : vector<1x2x256xf32> to vector<2x256xf32>
    %8 = vector.extract_strided_slice %7 {offsets = [0, 0], sizes = [2, 128], strides = [1, 1]} : vector<2x256xf32> to vector<2x128xf32>
    %9 = vector.extract_strided_slice %4 {offsets = [0, 0], sizes = [2, 128], strides = [1, 1]} : vector<2x256xf32> to vector<2x128xf32>
    %10 = arith.addf %8, %9 : vector<2x128xf32>
    %11 = vector.extract_strided_slice %2 {offsets = [0, 0], sizes = [2, 32], strides = [1, 1]} : vector<2x64xf32> to vector<2x32xf32>
    %12 = vector.extract_strided_slice %10 {offsets = [0, 0], sizes = [2, 32], strides = [1, 1]} : vector<2x128xf32> to vector<2x32xf32>
    %cst_5 = arith.constant 0.000000e+00 : f32
    %13 = vector.broadcast %cst_5 : f32 to vector<2x32xf32>
    %14 = arith.subf %13, %12 : vector<2x32xf32>
    %15 = math.exp %14 : vector<2x32xf32>
    %cst_6 = arith.constant 1.000000e+00 : f32
    %16 = vector.broadcast %cst_6 : f32 to vector<2x32xf32>
    %17 = arith.addf %16, %15 : vector<2x32xf32>
    %cst_7 = arith.constant 1.000000e+00 : f32
    %18 = vector.broadcast %cst_7 : f32 to vector<2x32xf32>
    %19 = arith.divf %18, %17 : vector<2x32xf32>
    %20 = vector.extract_strided_slice %10 {offsets = [0, 32], sizes = [2, 32], strides = [1, 1]} : vector<2x128xf32> to vector<2x32xf32>
    %cst_8 = arith.constant 0.000000e+00 : f32
    %21 = vector.broadcast %cst_8 : f32 to vector<2x32xf32>
    %22 = arith.subf %21, %20 : vector<2x32xf32>
    %23 = math.exp %22 : vector<2x32xf32>
    %cst_9 = arith.constant 1.000000e+00 : f32
    %24 = vector.broadcast %cst_9 : f32 to vector<2x32xf32>
    %25 = arith.addf %24, %23 : vector<2x32xf32>
    %cst_10 = arith.constant 1.000000e+00 : f32
    %26 = vector.broadcast %cst_10 : f32 to vector<2x32xf32>
    %27 = arith.divf %26, %25 : vector<2x32xf32>
    %28 = vector.extract_strided_slice %10 {offsets = [0, 64], sizes = [2, 32], strides = [1, 1]} : vector<2x128xf32> to vector<2x32xf32>
    %29 = math.tanh %28 : vector<2x32xf32>
    %30 = vector.extract_strided_slice %10 {offsets = [0, 96], sizes = [2, 32], strides = [1, 1]} : vector<2x128xf32> to vector<2x32xf32>
    %cst_11 = arith.constant 0.000000e+00 : f32
    %31 = vector.broadcast %cst_11 : f32 to vector<2x32xf32>
    %32 = arith.subf %31, %30 : vector<2x32xf32>
    %33 = math.exp %32 : vector<2x32xf32>
    %cst_12 = arith.constant 1.000000e+00 : f32
    %34 = vector.broadcast %cst_12 : f32 to vector<2x32xf32>
    %35 = arith.addf %34, %33 : vector<2x32xf32>
    %cst_13 = arith.constant 1.000000e+00 : f32
    %36 = vector.broadcast %cst_13 : f32 to vector<2x32xf32>
    %37 = arith.divf %36, %35 : vector<2x32xf32>
    %38 = arith.mulf %27, %11 : vector<2x32xf32>
    %39 = arith.mulf %19, %29 : vector<2x32xf32>
    %40 = arith.addf %38, %39 : vector<2x32xf32>
    %41 = math.tanh %40 : vector<2x32xf32>
    %42 = arith.mulf %37, %41 : vector<2x32xf32>
    %43 = arith.index_cast %c0_i32 : i32 to index
    %c0_14 = arith.constant 0 : index
    %c0_15 = arith.constant 0 : index
    %44 = vector.load %arg4[%43, %c0_14, %c0_15] : memref<8x2x32xf32, #tpu.memory_space<vmem>>, vector<1x2x32xf32>
    %45 = vector.shape_cast %44 : vector<1x2x32xf32> to vector<2x32xf32>
    %46 = vector.shape_cast %42 : vector<2x32xf32> to vector<1x2x32xf32>
    tpu.vector_store %arg4[%43, %c0_14, %c0_15], %46 {strides = array<i32>} : memref<8x2x32xf32, #tpu.memory_space<vmem>>, vector<1x2x32xf32>,
    %c7_i32 = arith.constant 7 : i32
    %47 = arith.subi %c7_i32, %c0_i32 : i32
    %48 = arith.index_cast %47 : i32 to index
    %c0_16 = arith.constant 0 : index
    %c0_17 = arith.constant 0 : index
    %49 = vector.load %arg1[%48, %c0_16, %c0_17] : memref<8x2x256xf32, #tpu.memory_space<vmem>>, vector<1x2x256xf32>
    %50 = vector.shape_cast %49 : vector<1x2x256xf32> to vector<2x256xf32>
    %51 = vector.extract_strided_slice %50 {offsets = [0, 128], sizes = [2, 128], strides = [1, 1]} : vector<2x256xf32> to vector<2x128xf32>
    %52 = vector.extract_strided_slice %4 {offsets = [0, 128], sizes = [2, 128], strides = [1, 1]} : vector<2x256xf32> to vector<2x128xf32>
    %53 = arith.addf %51, %52 : vector<2x128xf32>
    %54 = vector.extract_strided_slice %2 {offsets = [0, 32], sizes = [2, 32], strides = [1, 1]} : vector<2x64xf32> to vector<2x32xf32>
    %55 = vector.extract_strided_slice %53 {offsets = [0, 0], sizes = [2, 32], strides = [1, 1]} : vector<2x128xf32> to vector<2x32xf32>
    %cst_18 = arith.constant 0.000000e+00 : f32
    %56 = vector.broadcast %cst_18 : f32 to vector<2x32xf32>
    %57 = arith.subf %56, %55 : vector<2x32xf32>
    %58 = math.exp %57 : vector<2x32xf32>
    %cst_19 = arith.constant 1.000000e+00 : f32
    %59 = vector.broadcast %cst_19 : f32 to vector<2x32xf32>
    %60 = arith.addf %59, %58 : vector<2x32xf32>
    %cst_20 = arith.constant 1.000000e+00 : f32
    %61 = vector.broadcast %cst_20 : f32 to vector<2x32xf32>
    %62 = arith.divf %61, %60 : vector<2x32xf32>
    %63 = vector.extract_strided_slice %53 {offsets = [0, 32], sizes = [2, 32], strides = [1, 1]} : vector<2x128xf32> to vector<2x32xf32>
    %cst_21 = arith.constant 0.000000e+00 : f32
    %64 = vector.broadcast %cst_21 : f32 to vector<2x32xf32>
    %65 = arith.subf %64, %63 : vector<2x32xf32>
    %66 = math.exp %65 : vector<2x32xf32>
    %cst_22 = arith.constant 1.000000e+00 : f32
    %67 = vector.broadcast %cst_22 : f32 to vector<2x32xf32>
    %68 = arith.addf %67, %66 : vector<2x32xf32>
    %cst_23 = arith.constant 1.000000e+00 : f32
    %69 = vector.broadcast %cst_23 : f32 to vector<2x32xf32>
    %70 = arith.divf %69, %68 : vector<2x32xf32>
    %71 = vector.extract_strided_slice %53 {offsets = [0, 64], sizes = [2, 32], strides = [1, 1]} : vector<2x128xf32> to vector<2x32xf32>
    %72 = math.tanh %71 : vector<2x32xf32>
    %73 = vector.extract_strided_slice %53 {offsets = [0, 96], sizes = [2, 32], strides = [1, 1]} : vector<2x128xf32> to vector<2x32xf32>
    %cst_24 = arith.constant 0.000000e+00 : f32
    %74 = vector.broadcast %cst_24 : f32 to vector<2x32xf32>
    %75 = arith.subf %74, %73 : vector<2x32xf32>
    %76 = math.exp %75 : vector<2x32xf32>
    %cst_25 = arith.constant 1.000000e+00 : f32
    %77 = vector.broadcast %cst_25 : f32 to vector<2x32xf32>
    %78 = arith.addf %77, %76 : vector<2x32xf32>
    %cst_26 = arith.constant 1.000000e+00 : f32
    %79 = vector.broadcast %cst_26 : f32 to vector<2x32xf32>
    %80 = arith.divf %79, %78 : vector<2x32xf32>
    %81 = arith.mulf %70, %54 : vector<2x32xf32>
    %82 = arith.mulf %62, %72 : vector<2x32xf32>
    %83 = arith.addf %81, %82 : vector<2x32xf32>
    %84 = math.tanh %83 : vector<2x32xf32>
    %85 = arith.mulf %80, %84 : vector<2x32xf32>
    %86 = arith.index_cast %47 : i32 to index
    %c0_27 = arith.constant 0 : index
    %c0_28 = arith.constant 0 : index
    %87 = vector.load %arg5[%86, %c0_27, %c0_28] : memref<8x2x32xf32, #tpu.memory_space<vmem>>, vector<1x2x32xf32>
    %88 = vector.shape_cast %87 : vector<1x2x32xf32> to vector<2x32xf32>
    %89 = vector.shape_cast %85 : vector<2x32xf32> to vector<1x2x32xf32>
    tpu.vector_store %arg5[%86, %c0_27, %c0_28], %89 {strides = array<i32>} : memref<8x2x32xf32, #tpu.memory_space<vmem>>, vector<1x2x32xf32>,
    %90 = tpu.concatenate %42, %85 in 1 : vector<2x32xf32>, vector<2x32xf32> -> vector<2x64xf32>
    %91 = tpu.concatenate %40, %83 in 1 : vector<2x32xf32>, vector<2x32xf32> -> vector<2x64xf32>
    %c1_i32 = arith.constant 1 : i32
    %92 = arith.truncf %90 : vector<2x64xf32> to vector<2x64xbf16>
    %cst_29 = arith.constant dense<0.000000e+00> : vector<2x256xf32>
    %93 = tpu.matmul %92, %0, %cst_29 {dimension_numbers = #tpu.dot_dimension_numbers<[1], [0], [0], [1], [0, 0, 1, 1], [], []>} : vector<2x64xbf16>, vector<64x256xbf16>, vector<2x256xf32> -> vector<2x256xf32>
    %94 = arith.index_cast %c1_i32 : i32 to index
    %c0_30 = arith.constant 0 : index
    %c0_31 = arith.constant 0 : index
    %95 = vector.load %arg1[%94, %c0_30, %c0_31] : memref<8x2x256xf32, #tpu.memory_space<vmem>>, vector<1x2x256xf32>
    %96 = vector.shape_cast %95 : vector<1x2x256xf32> to vector<2x256xf32>
    %97 = vector.extract_strided_slice %96 {offsets = [0, 0], sizes = [2, 128], strides = [1, 1]} : vector<2x256xf32> to vector<2x128xf32>
    %98 = vector.extract_strided_slice %93 {offsets = [0, 0], sizes = [2, 128], strides = [1, 1]} : vector<2x256xf32> to vector<2x128xf32>
    %99 = arith.addf %97, %98 : vector<2x128xf32>
    %100 = vector.extract_strided_slice %91 {offsets = [0, 0], sizes = [2, 32], strides = [1, 1]} : vector<2x64xf32> to vector<2x32xf32>
    %101 = vector.extract_strided_slice %99 {offsets = [0, 0], sizes = [2, 32], strides = [1, 1]} : vector<2x128xf32> to vector<2x32xf32>
    %cst_32 = arith.constant 0.000000e+00 : f32
    %102 = vector.broadcast %cst_32 : f32 to vector<2x32xf32>
    %103 = arith.subf %102, %101 : vector<2x32xf32>
    %104 = math.exp %103 : vector<2x32xf32>
    %cst_33 = arith.constant 1.000000e+00 : f32
    %105 = vector.broadcast %cst_33 : f32 to vector<2x32xf32>
    %106 = arith.addf %105, %104 : vector<2x32xf32>
    %cst_34 = arith.constant 1.000000e+00 : f32
    %107 = vector.broadcast %cst_34 : f32 to vector<2x32xf32>
    %108 = arith.divf %107, %106 : vector<2x32xf32>
    %109 = vector.extract_strided_slice %99 {offsets = [0, 32], sizes = [2, 32], strides = [1, 1]} : vector<2x128xf32> to vector<2x32xf32>
    %cst_35 = arith.constant 0.000000e+00 : f32
    %110 = vector.broadcast %cst_35 : f32 to vector<2x32xf32>
    %111 = arith.subf %110, %109 : vector<2x32xf32>
    %112 = math.exp %111 : vector<2x32xf32>
    %cst_36 = arith.constant 1.000000e+00 : f32
    %113 = vector.broadcast %cst_36 : f32 to vector<2x32xf32>
    %114 = arith.addf %113, %112 : vector<2x32xf32>
    %cst_37 = arith.constant 1.000000e+00 : f32
    %115 = vector.broadcast %cst_37 : f32 to vector<2x32xf32>
    %116 = arith.divf %115, %114 : vector<2x32xf32>
    %117 = vector.extract_strided_slice %99 {offsets = [0, 64], sizes = [2, 32], strides = [1, 1]} : vector<2x128xf32> to vector<2x32xf32>
    %118 = math.tanh %117 : vector<2x32xf32>
    %119 = vector.extract_strided_slice %99 {offsets = [0, 96], sizes = [2, 32], strides = [1, 1]} : vector<2x128xf32> to vector<2x32xf32>
    %cst_38 = arith.constant 0.000000e+00 : f32
    %120 = vector.broadcast %cst_38 : f32 to vector<2x32xf32>
    %121 = arith.subf %120, %119 : vector<2x32xf32>
    %122 = math.exp %121 : vector<2x32xf32>
    %cst_39 = arith.constant 1.000000e+00 : f32
    %123 = vector.broadcast %cst_39 : f32 to vector<2x32xf32>
    %124 = arith.addf %123, %122 : vector<2x32xf32>
    %cst_40 = arith.constant 1.000000e+00 : f32
    %125 = vector.broadcast %cst_40 : f32 to vector<2x32xf32>
    %126 = arith.divf %125, %124 : vector<2x32xf32>
    %127 = arith.mulf %116, %100 : vector<2x32xf32>
    %128 = arith.mulf %108, %118 : vector<2x32xf32>
    %129 = arith.addf %127, %128 : vector<2x32xf32>
    %130 = math.tanh %129 : vector<2x32xf32>
    %131 = arith.mulf %126, %130 : vector<2x32xf32>
    %132 = arith.index_cast %c1_i32 : i32 to index
    %c0_41 = arith.constant 0 : index
    %c0_42 = arith.constant 0 : index
    %133 = vector.load %arg4[%132, %c0_41, %c0_42] : memref<8x2x32xf32, #tpu.memory_space<vmem>>, vector<1x2x32xf32>
    %134 = vector.shape_cast %133 : vector<1x2x32xf32> to vector<2x32xf32>
    %135 = vector.shape_cast %131 : vector<2x32xf32> to vector<1x2x32xf32>
    tpu.vector_store %arg4[%132, %c0_41, %c0_42], %135 {strides = array<i32>} : memref<8x2x32xf32, #tpu.memory_space<vmem>>, vector<1x2x32xf32>,
    %c7_i32_43 = arith.constant 7 : i32
    %136 = arith.subi %c7_i32_43, %c1_i32 : i32
    %137 = arith.index_cast %136 : i32 to index
    %c0_44 = arith.constant 0 : index
    %c0_45 = arith.constant 0 : index
    %138 = vector.load %arg1[%137, %c0_44, %c0_45] : memref<8x2x256xf32, #tpu.memory_space<vmem>>, vector<1x2x256xf32>
    %139 = vector.shape_cast %138 : vector<1x2x256xf32> to vector<2x256xf32>
    %140 = vector.extract_strided_slice %139 {offsets = [0, 128], sizes = [2, 128], strides = [1, 1]} : vector<2x256xf32> to vector<2x128xf32>
    %141 = vector.extract_strided_slice %93 {offsets = [0, 128], sizes = [2, 128], strides = [1, 1]} : vector<2x256xf32> to vector<2x128xf32>
    %142 = arith.addf %140, %141 : vector<2x128xf32>
    %143 = vector.extract_strided_slice %91 {offsets = [0, 32], sizes = [2, 32], strides = [1, 1]} : vector<2x64xf32> to vector<2x32xf32>
    %144 = vector.extract_strided_slice %142 {offsets = [0, 0], sizes = [2, 32], strides = [1, 1]} : vector<2x128xf32> to vector<2x32xf32>
    %cst_46 = arith.constant 0.000000e+00 : f32
    %145 = vector.broadcast %cst_46 : f32 to vector<2x32xf32>
    %146 = arith.subf %145, %144 : vector<2x32xf32>
    %147 = math.exp %146 : vector<2x32xf32>
    %cst_47 = arith.constant 1.000000e+00 : f32
    %148 = vector.broadcast %cst_47 : f32 to vector<2x32xf32>
    %149 = arith.addf %148, %147 : vector<2x32xf32>
    %cst_48 = arith.constant 1.000000e+00 : f32
    %150 = vector.broadcast %cst_48 : f32 to vector<2x32xf32>
    %151 = arith.divf %150, %149 : vector<2x32xf32>
    %152 = vector.extract_strided_slice %142 {offsets = [0, 32], sizes = [2, 32], strides = [1, 1]} : vector<2x128xf32> to vector<2x32xf32>
    %cst_49 = arith.constant 0.000000e+00 : f32
    %153 = vector.broadcast %cst_49 : f32 to vector<2x32xf32>
    %154 = arith.subf %153, %152 : vector<2x32xf32>
    %155 = math.exp %154 : vector<2x32xf32>
    %cst_50 = arith.constant 1.000000e+00 : f32
    %156 = vector.broadcast %cst_50 : f32 to vector<2x32xf32>
    %157 = arith.addf %156, %155 : vector<2x32xf32>
    %cst_51 = arith.constant 1.000000e+00 : f32
    %158 = vector.broadcast %cst_51 : f32 to vector<2x32xf32>
    %159 = arith.divf %158, %157 : vector<2x32xf32>
    %160 = vector.extract_strided_slice %142 {offsets = [0, 64], sizes = [2, 32], strides = [1, 1]} : vector<2x128xf32> to vector<2x32xf32>
    %161 = math.tanh %160 : vector<2x32xf32>
    %162 = vector.extract_strided_slice %142 {offsets = [0, 96], sizes = [2, 32], strides = [1, 1]} : vector<2x128xf32> to vector<2x32xf32>
    %cst_52 = arith.constant 0.000000e+00 : f32
    %163 = vector.broadcast %cst_52 : f32 to vector<2x32xf32>
    %164 = arith.subf %163, %162 : vector<2x32xf32>
    %165 = math.exp %164 : vector<2x32xf32>
    %cst_53 = arith.constant 1.000000e+00 : f32
    %166 = vector.broadcast %cst_53 : f32 to vector<2x32xf32>
    %167 = arith.addf %166, %165 : vector<2x32xf32>
    %cst_54 = arith.constant 1.000000e+00 : f32
    %168 = vector.broadcast %cst_54 : f32 to vector<2x32xf32>
    %169 = arith.divf %168, %167 : vector<2x32xf32>
    %170 = arith.mulf %159, %143 : vector<2x32xf32>
    %171 = arith.mulf %151, %161 : vector<2x32xf32>
    %172 = arith.addf %170, %171 : vector<2x32xf32>
    %173 = math.tanh %172 : vector<2x32xf32>
    %174 = arith.mulf %169, %173 : vector<2x32xf32>
    %175 = arith.index_cast %136 : i32 to index
    %c0_55 = arith.constant 0 : index
    %c0_56 = arith.constant 0 : index
    %176 = vector.load %arg5[%175, %c0_55, %c0_56] : memref<8x2x32xf32, #tpu.memory_space<vmem>>, vector<1x2x32xf32>
    %177 = vector.shape_cast %176 : vector<1x2x32xf32> to vector<2x32xf32>
    %178 = vector.shape_cast %174 : vector<2x32xf32> to vector<1x2x32xf32>
    tpu.vector_store %arg5[%175, %c0_55, %c0_56], %178 {strides = array<i32>} : memref<8x2x32xf32, #tpu.memory_space<vmem>>, vector<1x2x32xf32>,
    %179 = tpu.concatenate %131, %174 in 1 : vector<2x32xf32>, vector<2x32xf32> -> vector<2x64xf32>
    %180 = tpu.concatenate %129, %172 in 1 : vector<2x32xf32>, vector<2x32xf32> -> vector<2x64xf32>
    %c2_i32 = arith.constant 2 : i32
    %181 = arith.truncf %179 : vector<2x64xf32> to vector<2x64xbf16>
    %cst_57 = arith.constant dense<0.000000e+00> : vector<2x256xf32>
    %182 = tpu.matmul %181, %0, %cst_57 {dimension_numbers = #tpu.dot_dimension_numbers<[1], [0], [0], [1], [0, 0, 1, 1], [], []>} : vector<2x64xbf16>, vector<64x256xbf16>, vector<2x256xf32> -> vector<2x256xf32>
    %183 = arith.index_cast %c2_i32 : i32 to index
    %c0_58 = arith.constant 0 : index
    %c0_59 = arith.constant 0 : index
    %184 = vector.load %arg1[%183, %c0_58, %c0_59] : memref<8x2x256xf32, #tpu.memory_space<vmem>>, vector<1x2x256xf32>
    %185 = vector.shape_cast %184 : vector<1x2x256xf32> to vector<2x256xf32>
    %186 = vector.extract_strided_slice %185 {offsets = [0, 0], sizes = [2, 128], strides = [1, 1]} : vector<2x256xf32> to vector<2x128xf32>
    %187 = vector.extract_strided_slice %182 {offsets = [0, 0], sizes = [2, 128], strides = [1, 1]} : vector<2x256xf32> to vector<2x128xf32>
    %188 = arith.addf %186, %187 : vector<2x128xf32>
    %189 = vector.extract_strided_slice %180 {offsets = [0, 0], sizes = [2, 32], strides = [1, 1]} : vector<2x64xf32> to vector<2x32xf32>
    %190 = vector.extract_strided_slice %188 {offsets = [0, 0], sizes = [2, 32], strides = [1, 1]} : vector<2x128xf32> to vector<2x32xf32>
    %cst_60 = arith.constant 0.000000e+00 : f32
    %191 = vector.broadcast %cst_60 : f32 to vector<2x32xf32>
    %192 = arith.subf %191, %190 : vector<2x32xf32>
    %193 = math.exp %192 : vector<2x32xf32>
    %cst_61 = arith.constant 1.000000e+00 : f32
    %194 = vector.broadcast %cst_61 : f32 to vector<2x32xf32>
    %195 = arith.addf %194, %193 : vector<2x32xf32>
    %cst_62 = arith.constant 1.000000e+00 : f32
    %196 = vector.broadcast %cst_62 : f32 to vector<2x32xf32>
    %197 = arith.divf %196, %195 : vector<2x32xf32>
    %198 = vector.extract_strided_slice %188 {offsets = [0, 32], sizes = [2, 32], strides = [1, 1]} : vector<2x128xf32> to vector<2x32xf32>
    %cst_63 = arith.constant 0.000000e+00 : f32
    %199 = vector.broadcast %cst_63 : f32 to vector<2x32xf32>
    %200 = arith.subf %199, %198 : vector<2x32xf32>
    %201 = math.exp %200 : vector<2x32xf32>
    %cst_64 = arith.constant 1.000000e+00 : f32
    %202 = vector.broadcast %cst_64 : f32 to vector<2x32xf32>
    %203 = arith.addf %202, %201 : vector<2x32xf32>
    %cst_65 = arith.constant 1.000000e+00 : f32
    %204 = vector.broadcast %cst_65 : f32 to vector<2x32xf32>
    %205 = arith.divf %204, %203 : vector<2x32xf32>
    %206 = vector.extract_strided_slice %188 {offsets = [0, 64], sizes = [2, 32], strides = [1, 1]} : vector<2x128xf32> to vector<2x32xf32>
    %207 = math.tanh %206 : vector<2x32xf32>
    %208 = vector.extract_strided_slice %188 {offsets = [0, 96], sizes = [2, 32], strides = [1, 1]} : vector<2x128xf32> to vector<2x32xf32>
    %cst_66 = arith.constant 0.000000e+00 : f32
    %209 = vector.broadcast %cst_66 : f32 to vector<2x32xf32>
    %210 = arith.subf %209, %208 : vector<2x32xf32>
    %211 = math.exp %210 : vector<2x32xf32>
    %cst_67 = arith.constant 1.000000e+00 : f32
    %212 = vector.broadcast %cst_67 : f32 to vector<2x32xf32>
    %213 = arith.addf %212, %211 : vector<2x32xf32>
    %cst_68 = arith.constant 1.000000e+00 : f32
    %214 = vector.broadcast %cst_68 : f32 to vector<2x32xf32>
    %215 = arith.divf %214, %213 : vector<2x32xf32>
    %216 = arith.mulf %205, %189 : vector<2x32xf32>
    %217 = arith.mulf %197, %207 : vector<2x32xf32>
    %218 = arith.addf %216, %217 : vector<2x32xf32>
    %219 = math.tanh %218 : vector<2x32xf32>
    %220 = arith.mulf %215, %219 : vector<2x32xf32>
    %221 = arith.index_cast %c2_i32 : i32 to index
    %c0_69 = arith.constant 0 : index
    %c0_70 = arith.constant 0 : index
    %222 = vector.load %arg4[%221, %c0_69, %c0_70] : memref<8x2x32xf32, #tpu.memory_space<vmem>>, vector<1x2x32xf32>
    %223 = vector.shape_cast %222 : vector<1x2x32xf32> to vector<2x32xf32>
    %224 = vector.shape_cast %220 : vector<2x32xf32> to vector<1x2x32xf32>
    tpu.vector_store %arg4[%221, %c0_69, %c0_70], %224 {strides = array<i32>} : memref<8x2x32xf32, #tpu.memory_space<vmem>>, vector<1x2x32xf32>,
    %c7_i32_71 = arith.constant 7 : i32
    %225 = arith.subi %c7_i32_71, %c2_i32 : i32
    %226 = arith.index_cast %225 : i32 to index
    %c0_72 = arith.constant 0 : index
    %c0_73 = arith.constant 0 : index
    %227 = vector.load %arg1[%226, %c0_72, %c0_73] : memref<8x2x256xf32, #tpu.memory_space<vmem>>, vector<1x2x256xf32>
    %228 = vector.shape_cast %227 : vector<1x2x256xf32> to vector<2x256xf32>
    %229 = vector.extract_strided_slice %228 {offsets = [0, 128], sizes = [2, 128], strides = [1, 1]} : vector<2x256xf32> to vector<2x128xf32>
    %230 = vector.extract_strided_slice %182 {offsets = [0, 128], sizes = [2, 128], strides = [1, 1]} : vector<2x256xf32> to vector<2x128xf32>
    %231 = arith.addf %229, %230 : vector<2x128xf32>
    %232 = vector.extract_strided_slice %180 {offsets = [0, 32], sizes = [2, 32], strides = [1, 1]} : vector<2x64xf32> to vector<2x32xf32>
    %233 = vector.extract_strided_slice %231 {offsets = [0, 0], sizes = [2, 32], strides = [1, 1]} : vector<2x128xf32> to vector<2x32xf32>
    %cst_74 = arith.constant 0.000000e+00 : f32
    %234 = vector.broadcast %cst_74 : f32 to vector<2x32xf32>
    %235 = arith.subf %234, %233 : vector<2x32xf32>
    %236 = math.exp %235 : vector<2x32xf32>
    %cst_75 = arith.constant 1.000000e+00 : f32
    %237 = vector.broadcast %cst_75 : f32 to vector<2x32xf32>
    %238 = arith.addf %237, %236 : vector<2x32xf32>
    %cst_76 = arith.constant 1.000000e+00 : f32
    %239 = vector.broadcast %cst_76 : f32 to vector<2x32xf32>
    %240 = arith.divf %239, %238 : vector<2x32xf32>
    %241 = vector.extract_strided_slice %231 {offsets = [0, 32], sizes = [2, 32], strides = [1, 1]} : vector<2x128xf32> to vector<2x32xf32>
    %cst_77 = arith.constant 0.000000e+00 : f32
    %242 = vector.broadcast %cst_77 : f32 to vector<2x32xf32>
    %243 = arith.subf %242, %241 : vector<2x32xf32>
    %244 = math.exp %243 : vector<2x32xf32>
    %cst_78 = arith.constant 1.000000e+00 : f32
    %245 = vector.broadcast %cst_78 : f32 to vector<2x32xf32>
    %246 = arith.addf %245, %244 : vector<2x32xf32>
    %cst_79 = arith.constant 1.000000e+00 : f32
    %247 = vector.broadcast %cst_79 : f32 to vector<2x32xf32>
    %248 = arith.divf %247, %246 : vector<2x32xf32>
    %249 = vector.extract_strided_slice %231 {offsets = [0, 64], sizes = [2, 32], strides = [1, 1]} : vector<2x128xf32> to vector<2x32xf32>
    %250 = math.tanh %249 : vector<2x32xf32>
    %251 = vector.extract_strided_slice %231 {offsets = [0, 96], sizes = [2, 32], strides = [1, 1]} : vector<2x128xf32> to vector<2x32xf32>
    %cst_80 = arith.constant 0.000000e+00 : f32
    %252 = vector.broadcast %cst_80 : f32 to vector<2x32xf32>
    %253 = arith.subf %252, %251 : vector<2x32xf32>
    %254 = math.exp %253 : vector<2x32xf32>
    %cst_81 = arith.constant 1.000000e+00 : f32
    %255 = vector.broadcast %cst_81 : f32 to vector<2x32xf32>
    %256 = arith.addf %255, %254 : vector<2x32xf32>
    %cst_82 = arith.constant 1.000000e+00 : f32
    %257 = vector.broadcast %cst_82 : f32 to vector<2x32xf32>
    %258 = arith.divf %257, %256 : vector<2x32xf32>
    %259 = arith.mulf %248, %232 : vector<2x32xf32>
    %260 = arith.mulf %240, %250 : vector<2x32xf32>
    %261 = arith.addf %259, %260 : vector<2x32xf32>
    %262 = math.tanh %261 : vector<2x32xf32>
    %263 = arith.mulf %258, %262 : vector<2x32xf32>
    %264 = arith.index_cast %225 : i32 to index
    %c0_83 = arith.constant 0 : index
    %c0_84 = arith.constant 0 : index
    %265 = vector.load %arg5[%264, %c0_83, %c0_84] : memref<8x2x32xf32, #tpu.memory_space<vmem>>, vector<1x2x32xf32>
    %266 = vector.shape_cast %265 : vector<1x2x32xf32> to vector<2x32xf32>
    %267 = vector.shape_cast %263 : vector<2x32xf32> to vector<1x2x32xf32>
    tpu.vector_store %arg5[%264, %c0_83, %c0_84], %267 {strides = array<i32>} : memref<8x2x32xf32, #tpu.memory_space<vmem>>, vector<1x2x32xf32>,
    %268 = tpu.concatenate %220, %263 in 1 : vector<2x32xf32>, vector<2x32xf32> -> vector<2x64xf32>
    %269 = tpu.concatenate %218, %261 in 1 : vector<2x32xf32>, vector<2x32xf32> -> vector<2x64xf32>
    %c3_i32 = arith.constant 3 : i32
    %270 = arith.truncf %268 : vector<2x64xf32> to vector<2x64xbf16>
    %cst_85 = arith.constant dense<0.000000e+00> : vector<2x256xf32>
    %271 = tpu.matmul %270, %0, %cst_85 {dimension_numbers = #tpu.dot_dimension_numbers<[1], [0], [0], [1], [0, 0, 1, 1], [], []>} : vector<2x64xbf16>, vector<64x256xbf16>, vector<2x256xf32> -> vector<2x256xf32>
    %272 = arith.index_cast %c3_i32 : i32 to index
    %c0_86 = arith.constant 0 : index
    %c0_87 = arith.constant 0 : index
    %273 = vector.load %arg1[%272, %c0_86, %c0_87] : memref<8x2x256xf32, #tpu.memory_space<vmem>>, vector<1x2x256xf32>
    %274 = vector.shape_cast %273 : vector<1x2x256xf32> to vector<2x256xf32>
    %275 = vector.extract_strided_slice %274 {offsets = [0, 0], sizes = [2, 128], strides = [1, 1]} : vector<2x256xf32> to vector<2x128xf32>
    %276 = vector.extract_strided_slice %271 {offsets = [0, 0], sizes = [2, 128], strides = [1, 1]} : vector<2x256xf32> to vector<2x128xf32>
    %277 = arith.addf %275, %276 : vector<2x128xf32>
    %278 = vector.extract_strided_slice %269 {offsets = [0, 0], sizes = [2, 32], strides = [1, 1]} : vector<2x64xf32> to vector<2x32xf32>
    %279 = vector.extract_strided_slice %277 {offsets = [0, 0], sizes = [2, 32], strides = [1, 1]} : vector<2x128xf32> to vector<2x32xf32>
    %cst_88 = arith.constant 0.000000e+00 : f32
    %280 = vector.broadcast %cst_88 : f32 to vector<2x32xf32>
    %281 = arith.subf %280, %279 : vector<2x32xf32>
    %282 = math.exp %281 : vector<2x32xf32>
    %cst_89 = arith.constant 1.000000e+00 : f32
    %283 = vector.broadcast %cst_89 : f32 to vector<2x32xf32>
    %284 = arith.addf %283, %282 : vector<2x32xf32>
    %cst_90 = arith.constant 1.000000e+00 : f32
    %285 = vector.broadcast %cst_90 : f32 to vector<2x32xf32>
    %286 = arith.divf %285, %284 : vector<2x32xf32>
    %287 = vector.extract_strided_slice %277 {offsets = [0, 32], sizes = [2, 32], strides = [1, 1]} : vector<2x128xf32> to vector<2x32xf32>
    %cst_91 = arith.constant 0.000000e+00 : f32
    %288 = vector.broadcast %cst_91 : f32 to vector<2x32xf32>
    %289 = arith.subf %288, %287 : vector<2x32xf32>
    %290 = math.exp %289 : vector<2x32xf32>
    %cst_92 = arith.constant 1.000000e+00 : f32
    %291 = vector.broadcast %cst_92 : f32 to vector<2x32xf32>
    %292 = arith.addf %291, %290 : vector<2x32xf32>
    %cst_93 = arith.constant 1.000000e+00 : f32
    %293 = vector.broadcast %cst_93 : f32 to vector<2x32xf32>
    %294 = arith.divf %293, %292 : vector<2x32xf32>
    %295 = vector.extract_strided_slice %277 {offsets = [0, 64], sizes = [2, 32], strides = [1, 1]} : vector<2x128xf32> to vector<2x32xf32>
    %296 = math.tanh %295 : vector<2x32xf32>
    %297 = vector.extract_strided_slice %277 {offsets = [0, 96], sizes = [2, 32], strides = [1, 1]} : vector<2x128xf32> to vector<2x32xf32>
    %cst_94 = arith.constant 0.000000e+00 : f32
    %298 = vector.broadcast %cst_94 : f32 to vector<2x32xf32>
    %299 = arith.subf %298, %297 : vector<2x32xf32>
    %300 = math.exp %299 : vector<2x32xf32>
    %cst_95 = arith.constant 1.000000e+00 : f32
    %301 = vector.broadcast %cst_95 : f32 to vector<2x32xf32>
    %302 = arith.addf %301, %300 : vector<2x32xf32>
    %cst_96 = arith.constant 1.000000e+00 : f32
    %303 = vector.broadcast %cst_96 : f32 to vector<2x32xf32>
    %304 = arith.divf %303, %302 : vector<2x32xf32>
    %305 = arith.mulf %294, %278 : vector<2x32xf32>
    %306 = arith.mulf %286, %296 : vector<2x32xf32>
    %307 = arith.addf %305, %306 : vector<2x32xf32>
    %308 = math.tanh %307 : vector<2x32xf32>
    %309 = arith.mulf %304, %308 : vector<2x32xf32>
    %310 = arith.index_cast %c3_i32 : i32 to index
    %c0_97 = arith.constant 0 : index
    %c0_98 = arith.constant 0 : index
    %311 = vector.load %arg4[%310, %c0_97, %c0_98] : memref<8x2x32xf32, #tpu.memory_space<vmem>>, vector<1x2x32xf32>
    %312 = vector.shape_cast %311 : vector<1x2x32xf32> to vector<2x32xf32>
    %313 = vector.shape_cast %309 : vector<2x32xf32> to vector<1x2x32xf32>
    tpu.vector_store %arg4[%310, %c0_97, %c0_98], %313 {strides = array<i32>} : memref<8x2x32xf32, #tpu.memory_space<vmem>>, vector<1x2x32xf32>,
    %c7_i32_99 = arith.constant 7 : i32
    %314 = arith.subi %c7_i32_99, %c3_i32 : i32
    %315 = arith.index_cast %314 : i32 to index
    %c0_100 = arith.constant 0 : index
    %c0_101 = arith.constant 0 : index
    %316 = vector.load %arg1[%315, %c0_100, %c0_101] : memref<8x2x256xf32, #tpu.memory_space<vmem>>, vector<1x2x256xf32>
    %317 = vector.shape_cast %316 : vector<1x2x256xf32> to vector<2x256xf32>
    %318 = vector.extract_strided_slice %317 {offsets = [0, 128], sizes = [2, 128], strides = [1, 1]} : vector<2x256xf32> to vector<2x128xf32>
    %319 = vector.extract_strided_slice %271 {offsets = [0, 128], sizes = [2, 128], strides = [1, 1]} : vector<2x256xf32> to vector<2x128xf32>
    %320 = arith.addf %318, %319 : vector<2x128xf32>
    %321 = vector.extract_strided_slice %269 {offsets = [0, 32], sizes = [2, 32], strides = [1, 1]} : vector<2x64xf32> to vector<2x32xf32>
    %322 = vector.extract_strided_slice %320 {offsets = [0, 0], sizes = [2, 32], strides = [1, 1]} : vector<2x128xf32> to vector<2x32xf32>
    %cst_102 = arith.constant 0.000000e+00 : f32
    %323 = vector.broadcast %cst_102 : f32 to vector<2x32xf32>
    %324 = arith.subf %323, %322 : vector<2x32xf32>
    %325 = math.exp %324 : vector<2x32xf32>
    %cst_103 = arith.constant 1.000000e+00 : f32
    %326 = vector.broadcast %cst_103 : f32 to vector<2x32xf32>
    %327 = arith.addf %326, %325 : vector<2x32xf32>
    %cst_104 = arith.constant 1.000000e+00 : f32
    %328 = vector.broadcast %cst_104 : f32 to vector<2x32xf32>
    %329 = arith.divf %328, %327 : vector<2x32xf32>
    %330 = vector.extract_strided_slice %320 {offsets = [0, 32], sizes = [2, 32], strides = [1, 1]} : vector<2x128xf32> to vector<2x32xf32>
    %cst_105 = arith.constant 0.000000e+00 : f32
    %331 = vector.broadcast %cst_105 : f32 to vector<2x32xf32>
    %332 = arith.subf %331, %330 : vector<2x32xf32>
    %333 = math.exp %332 : vector<2x32xf32>
    %cst_106 = arith.constant 1.000000e+00 : f32
    %334 = vector.broadcast %cst_106 : f32 to vector<2x32xf32>
    %335 = arith.addf %334, %333 : vector<2x32xf32>
    %cst_107 = arith.constant 1.000000e+00 : f32
    %336 = vector.broadcast %cst_107 : f32 to vector<2x32xf32>
    %337 = arith.divf %336, %335 : vector<2x32xf32>
    %338 = vector.extract_strided_slice %320 {offsets = [0, 64], sizes = [2, 32], strides = [1, 1]} : vector<2x128xf32> to vector<2x32xf32>
    %339 = math.tanh %338 : vector<2x32xf32>
    %340 = vector.extract_strided_slice %320 {offsets = [0, 96], sizes = [2, 32], strides = [1, 1]} : vector<2x128xf32> to vector<2x32xf32>
    %cst_108 = arith.constant 0.000000e+00 : f32
    %341 = vector.broadcast %cst_108 : f32 to vector<2x32xf32>
    %342 = arith.subf %341, %340 : vector<2x32xf32>
    %343 = math.exp %342 : vector<2x32xf32>
    %cst_109 = arith.constant 1.000000e+00 : f32
    %344 = vector.broadcast %cst_109 : f32 to vector<2x32xf32>
    %345 = arith.addf %344, %343 : vector<2x32xf32>
    %cst_110 = arith.constant 1.000000e+00 : f32
    %346 = vector.broadcast %cst_110 : f32 to vector<2x32xf32>
    %347 = arith.divf %346, %345 : vector<2x32xf32>
    %348 = arith.mulf %337, %321 : vector<2x32xf32>
    %349 = arith.mulf %329, %339 : vector<2x32xf32>
    %350 = arith.addf %348, %349 : vector<2x32xf32>
    %351 = math.tanh %350 : vector<2x32xf32>
    %352 = arith.mulf %347, %351 : vector<2x32xf32>
    %353 = arith.index_cast %314 : i32 to index
    %c0_111 = arith.constant 0 : index
    %c0_112 = arith.constant 0 : index
    %354 = vector.load %arg5[%353, %c0_111, %c0_112] : memref<8x2x32xf32, #tpu.memory_space<vmem>>, vector<1x2x32xf32>
    %355 = vector.shape_cast %354 : vector<1x2x32xf32> to vector<2x32xf32>
    %356 = vector.shape_cast %352 : vector<2x32xf32> to vector<1x2x32xf32>
    tpu.vector_store %arg5[%353, %c0_111, %c0_112], %356 {strides = array<i32>} : memref<8x2x32xf32, #tpu.memory_space<vmem>>, vector<1x2x32xf32>,
    %357 = tpu.concatenate %309, %352 in 1 : vector<2x32xf32>, vector<2x32xf32> -> vector<2x64xf32>
    %358 = tpu.concatenate %307, %350 in 1 : vector<2x32xf32>, vector<2x32xf32> -> vector<2x64xf32>
    %c4_i32 = arith.constant 4 : i32
    %359 = arith.truncf %357 : vector<2x64xf32> to vector<2x64xbf16>
    %cst_113 = arith.constant dense<0.000000e+00> : vector<2x256xf32>
    %360 = tpu.matmul %359, %0, %cst_113 {dimension_numbers = #tpu.dot_dimension_numbers<[1], [0], [0], [1], [0, 0, 1, 1], [], []>} : vector<2x64xbf16>, vector<64x256xbf16>, vector<2x256xf32> -> vector<2x256xf32>
    %361 = arith.index_cast %c4_i32 : i32 to index
    %c0_114 = arith.constant 0 : index
    %c0_115 = arith.constant 0 : index
    %362 = vector.load %arg1[%361, %c0_114, %c0_115] : memref<8x2x256xf32, #tpu.memory_space<vmem>>, vector<1x2x256xf32>
    %363 = vector.shape_cast %362 : vector<1x2x256xf32> to vector<2x256xf32>
    %364 = vector.extract_strided_slice %363 {offsets = [0, 0], sizes = [2, 128], strides = [1, 1]} : vector<2x256xf32> to vector<2x128xf32>
    %365 = vector.extract_strided_slice %360 {offsets = [0, 0], sizes = [2, 128], strides = [1, 1]} : vector<2x256xf32> to vector<2x128xf32>
    %366 = arith.addf %364, %365 : vector<2x128xf32>
    %367 = vector.extract_strided_slice %358 {offsets = [0, 0], sizes = [2, 32], strides = [1, 1]} : vector<2x64xf32> to vector<2x32xf32>
    %368 = vector.extract_strided_slice %366 {offsets = [0, 0], sizes = [2, 32], strides = [1, 1]} : vector<2x128xf32> to vector<2x32xf32>
    %cst_116 = arith.constant 0.000000e+00 : f32
    %369 = vector.broadcast %cst_116 : f32 to vector<2x32xf32>
    %370 = arith.subf %369, %368 : vector<2x32xf32>
    %371 = math.exp %370 : vector<2x32xf32>
    %cst_117 = arith.constant 1.000000e+00 : f32
    %372 = vector.broadcast %cst_117 : f32 to vector<2x32xf32>
    %373 = arith.addf %372, %371 : vector<2x32xf32>
    %cst_118 = arith.constant 1.000000e+00 : f32
    %374 = vector.broadcast %cst_118 : f32 to vector<2x32xf32>
    %375 = arith.divf %374, %373 : vector<2x32xf32>
    %376 = vector.extract_strided_slice %366 {offsets = [0, 32], sizes = [2, 32], strides = [1, 1]} : vector<2x128xf32> to vector<2x32xf32>
    %cst_119 = arith.constant 0.000000e+00 : f32
    %377 = vector.broadcast %cst_119 : f32 to vector<2x32xf32>
    %378 = arith.subf %377, %376 : vector<2x32xf32>
    %379 = math.exp %378 : vector<2x32xf32>
    %cst_120 = arith.constant 1.000000e+00 : f32
    %380 = vector.broadcast %cst_120 : f32 to vector<2x32xf32>
    %381 = arith.addf %380, %379 : vector<2x32xf32>
    %cst_121 = arith.constant 1.000000e+00 : f32
    %382 = vector.broadcast %cst_121 : f32 to vector<2x32xf32>
    %383 = arith.divf %382, %381 : vector<2x32xf32>
    %384 = vector.extract_strided_slice %366 {offsets = [0, 64], sizes = [2, 32], strides = [1, 1]} : vector<2x128xf32> to vector<2x32xf32>
    %385 = math.tanh %384 : vector<2x32xf32>
    %386 = vector.extract_strided_slice %366 {offsets = [0, 96], sizes = [2, 32], strides = [1, 1]} : vector<2x128xf32> to vector<2x32xf32>
    %cst_122 = arith.constant 0.000000e+00 : f32
    %387 = vector.broadcast %cst_122 : f32 to vector<2x32xf32>
    %388 = arith.subf %387, %386 : vector<2x32xf32>
    %389 = math.exp %388 : vector<2x32xf32>
    %cst_123 = arith.constant 1.000000e+00 : f32
    %390 = vector.broadcast %cst_123 : f32 to vector<2x32xf32>
    %391 = arith.addf %390, %389 : vector<2x32xf32>
    %cst_124 = arith.constant 1.000000e+00 : f32
    %392 = vector.broadcast %cst_124 : f32 to vector<2x32xf32>
    %393 = arith.divf %392, %391 : vector<2x32xf32>
    %394 = arith.mulf %383, %367 : vector<2x32xf32>
    %395 = arith.mulf %375, %385 : vector<2x32xf32>
    %396 = arith.addf %394, %395 : vector<2x32xf32>
    %397 = math.tanh %396 : vector<2x32xf32>
    %398 = arith.mulf %393, %397 : vector<2x32xf32>
    %399 = arith.index_cast %c4_i32 : i32 to index
    %c0_125 = arith.constant 0 : index
    %c0_126 = arith.constant 0 : index
    %400 = vector.load %arg4[%399, %c0_125, %c0_126] : memref<8x2x32xf32, #tpu.memory_space<vmem>>, vector<1x2x32xf32>
    %401 = vector.shape_cast %400 : vector<1x2x32xf32> to vector<2x32xf32>
    %402 = vector.shape_cast %398 : vector<2x32xf32> to vector<1x2x32xf32>
    tpu.vector_store %arg4[%399, %c0_125, %c0_126], %402 {strides = array<i32>} : memref<8x2x32xf32, #tpu.memory_space<vmem>>, vector<1x2x32xf32>,
    %c7_i32_127 = arith.constant 7 : i32
    %403 = arith.subi %c7_i32_127, %c4_i32 : i32
    %404 = arith.index_cast %403 : i32 to index
    %c0_128 = arith.constant 0 : index
    %c0_129 = arith.constant 0 : index
    %405 = vector.load %arg1[%404, %c0_128, %c0_129] : memref<8x2x256xf32, #tpu.memory_space<vmem>>, vector<1x2x256xf32>
    %406 = vector.shape_cast %405 : vector<1x2x256xf32> to vector<2x256xf32>
    %407 = vector.extract_strided_slice %406 {offsets = [0, 128], sizes = [2, 128], strides = [1, 1]} : vector<2x256xf32> to vector<2x128xf32>
    %408 = vector.extract_strided_slice %360 {offsets = [0, 128], sizes = [2, 128], strides = [1, 1]} : vector<2x256xf32> to vector<2x128xf32>
    %409 = arith.addf %407, %408 : vector<2x128xf32>
    %410 = vector.extract_strided_slice %358 {offsets = [0, 32], sizes = [2, 32], strides = [1, 1]} : vector<2x64xf32> to vector<2x32xf32>
    %411 = vector.extract_strided_slice %409 {offsets = [0, 0], sizes = [2, 32], strides = [1, 1]} : vector<2x128xf32> to vector<2x32xf32>
    %cst_130 = arith.constant 0.000000e+00 : f32
    %412 = vector.broadcast %cst_130 : f32 to vector<2x32xf32>
    %413 = arith.subf %412, %411 : vector<2x32xf32>
    %414 = math.exp %413 : vector<2x32xf32>
    %cst_131 = arith.constant 1.000000e+00 : f32
    %415 = vector.broadcast %cst_131 : f32 to vector<2x32xf32>
    %416 = arith.addf %415, %414 : vector<2x32xf32>
    %cst_132 = arith.constant 1.000000e+00 : f32
    %417 = vector.broadcast %cst_132 : f32 to vector<2x32xf32>
    %418 = arith.divf %417, %416 : vector<2x32xf32>
    %419 = vector.extract_strided_slice %409 {offsets = [0, 32], sizes = [2, 32], strides = [1, 1]} : vector<2x128xf32> to vector<2x32xf32>
    %cst_133 = arith.constant 0.000000e+00 : f32
    %420 = vector.broadcast %cst_133 : f32 to vector<2x32xf32>
    %421 = arith.subf %420, %419 : vector<2x32xf32>
    %422 = math.exp %421 : vector<2x32xf32>
    %cst_134 = arith.constant 1.000000e+00 : f32
    %423 = vector.broadcast %cst_134 : f32 to vector<2x32xf32>
    %424 = arith.addf %423, %422 : vector<2x32xf32>
    %cst_135 = arith.constant 1.000000e+00 : f32
    %425 = vector.broadcast %cst_135 : f32 to vector<2x32xf32>
    %426 = arith.divf %425, %424 : vector<2x32xf32>
    %427 = vector.extract_strided_slice %409 {offsets = [0, 64], sizes = [2, 32], strides = [1, 1]} : vector<2x128xf32> to vector<2x32xf32>
    %428 = math.tanh %427 : vector<2x32xf32>
    %429 = vector.extract_strided_slice %409 {offsets = [0, 96], sizes = [2, 32], strides = [1, 1]} : vector<2x128xf32> to vector<2x32xf32>
    %cst_136 = arith.constant 0.000000e+00 : f32
    %430 = vector.broadcast %cst_136 : f32 to vector<2x32xf32>
    %431 = arith.subf %430, %429 : vector<2x32xf32>
    %432 = math.exp %431 : vector<2x32xf32>
    %cst_137 = arith.constant 1.000000e+00 : f32
    %433 = vector.broadcast %cst_137 : f32 to vector<2x32xf32>
    %434 = arith.addf %433, %432 : vector<2x32xf32>
    %cst_138 = arith.constant 1.000000e+00 : f32
    %435 = vector.broadcast %cst_138 : f32 to vector<2x32xf32>
    %436 = arith.divf %435, %434 : vector<2x32xf32>
    %437 = arith.mulf %426, %410 : vector<2x32xf32>
    %438 = arith.mulf %418, %428 : vector<2x32xf32>
    %439 = arith.addf %437, %438 : vector<2x32xf32>
    %440 = math.tanh %439 : vector<2x32xf32>
    %441 = arith.mulf %436, %440 : vector<2x32xf32>
    %442 = arith.index_cast %403 : i32 to index
    %c0_139 = arith.constant 0 : index
    %c0_140 = arith.constant 0 : index
    %443 = vector.load %arg5[%442, %c0_139, %c0_140] : memref<8x2x32xf32, #tpu.memory_space<vmem>>, vector<1x2x32xf32>
    %444 = vector.shape_cast %443 : vector<1x2x32xf32> to vector<2x32xf32>
    %445 = vector.shape_cast %441 : vector<2x32xf32> to vector<1x2x32xf32>
    tpu.vector_store %arg5[%442, %c0_139, %c0_140], %445 {strides = array<i32>} : memref<8x2x32xf32, #tpu.memory_space<vmem>>, vector<1x2x32xf32>,
    %446 = tpu.concatenate %398, %441 in 1 : vector<2x32xf32>, vector<2x32xf32> -> vector<2x64xf32>
    %447 = tpu.concatenate %396, %439 in 1 : vector<2x32xf32>, vector<2x32xf32> -> vector<2x64xf32>
    %c5_i32 = arith.constant 5 : i32
    %448 = arith.truncf %446 : vector<2x64xf32> to vector<2x64xbf16>
    %cst_141 = arith.constant dense<0.000000e+00> : vector<2x256xf32>
    %449 = tpu.matmul %448, %0, %cst_141 {dimension_numbers = #tpu.dot_dimension_numbers<[1], [0], [0], [1], [0, 0, 1, 1], [], []>} : vector<2x64xbf16>, vector<64x256xbf16>, vector<2x256xf32> -> vector<2x256xf32>
    %450 = arith.index_cast %c5_i32 : i32 to index
    %c0_142 = arith.constant 0 : index
    %c0_143 = arith.constant 0 : index
    %451 = vector.load %arg1[%450, %c0_142, %c0_143] : memref<8x2x256xf32, #tpu.memory_space<vmem>>, vector<1x2x256xf32>
    %452 = vector.shape_cast %451 : vector<1x2x256xf32> to vector<2x256xf32>
    %453 = vector.extract_strided_slice %452 {offsets = [0, 0], sizes = [2, 128], strides = [1, 1]} : vector<2x256xf32> to vector<2x128xf32>
    %454 = vector.extract_strided_slice %449 {offsets = [0, 0], sizes = [2, 128], strides = [1, 1]} : vector<2x256xf32> to vector<2x128xf32>
    %455 = arith.addf %453, %454 : vector<2x128xf32>
    %456 = vector.extract_strided_slice %447 {offsets = [0, 0], sizes = [2, 32], strides = [1, 1]} : vector<2x64xf32> to vector<2x32xf32>
    %457 = vector.extract_strided_slice %455 {offsets = [0, 0], sizes = [2, 32], strides = [1, 1]} : vector<2x128xf32> to vector<2x32xf32>
    %cst_144 = arith.constant 0.000000e+00 : f32
    %458 = vector.broadcast %cst_144 : f32 to vector<2x32xf32>
    %459 = arith.subf %458, %457 : vector<2x32xf32>
    %460 = math.exp %459 : vector<2x32xf32>
    %cst_145 = arith.constant 1.000000e+00 : f32
    %461 = vector.broadcast %cst_145 : f32 to vector<2x32xf32>
    %462 = arith.addf %461, %460 : vector<2x32xf32>
    %cst_146 = arith.constant 1.000000e+00 : f32
    %463 = vector.broadcast %cst_146 : f32 to vector<2x32xf32>
    %464 = arith.divf %463, %462 : vector<2x32xf32>
    %465 = vector.extract_strided_slice %455 {offsets = [0, 32], sizes = [2, 32], strides = [1, 1]} : vector<2x128xf32> to vector<2x32xf32>
    %cst_147 = arith.constant 0.000000e+00 : f32
    %466 = vector.broadcast %cst_147 : f32 to vector<2x32xf32>
    %467 = arith.subf %466, %465 : vector<2x32xf32>
    %468 = math.exp %467 : vector<2x32xf32>
    %cst_148 = arith.constant 1.000000e+00 : f32
    %469 = vector.broadcast %cst_148 : f32 to vector<2x32xf32>
    %470 = arith.addf %469, %468 : vector<2x32xf32>
    %cst_149 = arith.constant 1.000000e+00 : f32
    %471 = vector.broadcast %cst_149 : f32 to vector<2x32xf32>
    %472 = arith.divf %471, %470 : vector<2x32xf32>
    %473 = vector.extract_strided_slice %455 {offsets = [0, 64], sizes = [2, 32], strides = [1, 1]} : vector<2x128xf32> to vector<2x32xf32>
    %474 = math.tanh %473 : vector<2x32xf32>
    %475 = vector.extract_strided_slice %455 {offsets = [0, 96], sizes = [2, 32], strides = [1, 1]} : vector<2x128xf32> to vector<2x32xf32>
    %cst_150 = arith.constant 0.000000e+00 : f32
    %476 = vector.broadcast %cst_150 : f32 to vector<2x32xf32>
    %477 = arith.subf %476, %475 : vector<2x32xf32>
    %478 = math.exp %477 : vector<2x32xf32>
    %cst_151 = arith.constant 1.000000e+00 : f32
    %479 = vector.broadcast %cst_151 : f32 to vector<2x32xf32>
    %480 = arith.addf %479, %478 : vector<2x32xf32>
    %cst_152 = arith.constant 1.000000e+00 : f32
    %481 = vector.broadcast %cst_152 : f32 to vector<2x32xf32>
    %482 = arith.divf %481, %480 : vector<2x32xf32>
    %483 = arith.mulf %472, %456 : vector<2x32xf32>
    %484 = arith.mulf %464, %474 : vector<2x32xf32>
    %485 = arith.addf %483, %484 : vector<2x32xf32>
    %486 = math.tanh %485 : vector<2x32xf32>
    %487 = arith.mulf %482, %486 : vector<2x32xf32>
    %488 = arith.index_cast %c5_i32 : i32 to index
    %c0_153 = arith.constant 0 : index
    %c0_154 = arith.constant 0 : index
    %489 = vector.load %arg4[%488, %c0_153, %c0_154] : memref<8x2x32xf32, #tpu.memory_space<vmem>>, vector<1x2x32xf32>
    %490 = vector.shape_cast %489 : vector<1x2x32xf32> to vector<2x32xf32>
    %491 = vector.shape_cast %487 : vector<2x32xf32> to vector<1x2x32xf32>
    tpu.vector_store %arg4[%488, %c0_153, %c0_154], %491 {strides = array<i32>} : memref<8x2x32xf32, #tpu.memory_space<vmem>>, vector<1x2x32xf32>,
    %c7_i32_155 = arith.constant 7 : i32
    %492 = arith.subi %c7_i32_155, %c5_i32 : i32
    %493 = arith.index_cast %492 : i32 to index
    %c0_156 = arith.constant 0 : index
    %c0_157 = arith.constant 0 : index
    %494 = vector.load %arg1[%493, %c0_156, %c0_157] : memref<8x2x256xf32, #tpu.memory_space<vmem>>, vector<1x2x256xf32>
    %495 = vector.shape_cast %494 : vector<1x2x256xf32> to vector<2x256xf32>
    %496 = vector.extract_strided_slice %495 {offsets = [0, 128], sizes = [2, 128], strides = [1, 1]} : vector<2x256xf32> to vector<2x128xf32>
    %497 = vector.extract_strided_slice %449 {offsets = [0, 128], sizes = [2, 128], strides = [1, 1]} : vector<2x256xf32> to vector<2x128xf32>
    %498 = arith.addf %496, %497 : vector<2x128xf32>
    %499 = vector.extract_strided_slice %447 {offsets = [0, 32], sizes = [2, 32], strides = [1, 1]} : vector<2x64xf32> to vector<2x32xf32>
    %500 = vector.extract_strided_slice %498 {offsets = [0, 0], sizes = [2, 32], strides = [1, 1]} : vector<2x128xf32> to vector<2x32xf32>
    %cst_158 = arith.constant 0.000000e+00 : f32
    %501 = vector.broadcast %cst_158 : f32 to vector<2x32xf32>
    %502 = arith.subf %501, %500 : vector<2x32xf32>
    %503 = math.exp %502 : vector<2x32xf32>
    %cst_159 = arith.constant 1.000000e+00 : f32
    %504 = vector.broadcast %cst_159 : f32 to vector<2x32xf32>
    %505 = arith.addf %504, %503 : vector<2x32xf32>
    %cst_160 = arith.constant 1.000000e+00 : f32
    %506 = vector.broadcast %cst_160 : f32 to vector<2x32xf32>
    %507 = arith.divf %506, %505 : vector<2x32xf32>
    %508 = vector.extract_strided_slice %498 {offsets = [0, 32], sizes = [2, 32], strides = [1, 1]} : vector<2x128xf32> to vector<2x32xf32>
    %cst_161 = arith.constant 0.000000e+00 : f32
    %509 = vector.broadcast %cst_161 : f32 to vector<2x32xf32>
    %510 = arith.subf %509, %508 : vector<2x32xf32>
    %511 = math.exp %510 : vector<2x32xf32>
    %cst_162 = arith.constant 1.000000e+00 : f32
    %512 = vector.broadcast %cst_162 : f32 to vector<2x32xf32>
    %513 = arith.addf %512, %511 : vector<2x32xf32>
    %cst_163 = arith.constant 1.000000e+00 : f32
    %514 = vector.broadcast %cst_163 : f32 to vector<2x32xf32>
    %515 = arith.divf %514, %513 : vector<2x32xf32>
    %516 = vector.extract_strided_slice %498 {offsets = [0, 64], sizes = [2, 32], strides = [1, 1]} : vector<2x128xf32> to vector<2x32xf32>
    %517 = math.tanh %516 : vector<2x32xf32>
    %518 = vector.extract_strided_slice %498 {offsets = [0, 96], sizes = [2, 32], strides = [1, 1]} : vector<2x128xf32> to vector<2x32xf32>
    %cst_164 = arith.constant 0.000000e+00 : f32
    %519 = vector.broadcast %cst_164 : f32 to vector<2x32xf32>
    %520 = arith.subf %519, %518 : vector<2x32xf32>
    %521 = math.exp %520 : vector<2x32xf32>
    %cst_165 = arith.constant 1.000000e+00 : f32
    %522 = vector.broadcast %cst_165 : f32 to vector<2x32xf32>
    %523 = arith.addf %522, %521 : vector<2x32xf32>
    %cst_166 = arith.constant 1.000000e+00 : f32
    %524 = vector.broadcast %cst_166 : f32 to vector<2x32xf32>
    %525 = arith.divf %524, %523 : vector<2x32xf32>
    %526 = arith.mulf %515, %499 : vector<2x32xf32>
    %527 = arith.mulf %507, %517 : vector<2x32xf32>
    %528 = arith.addf %526, %527 : vector<2x32xf32>
    %529 = math.tanh %528 : vector<2x32xf32>
    %530 = arith.mulf %525, %529 : vector<2x32xf32>
    %531 = arith.index_cast %492 : i32 to index
    %c0_167 = arith.constant 0 : index
    %c0_168 = arith.constant 0 : index
    %532 = vector.load %arg5[%531, %c0_167, %c0_168] : memref<8x2x32xf32, #tpu.memory_space<vmem>>, vector<1x2x32xf32>
    %533 = vector.shape_cast %532 : vector<1x2x32xf32> to vector<2x32xf32>
    %534 = vector.shape_cast %530 : vector<2x32xf32> to vector<1x2x32xf32>
    tpu.vector_store %arg5[%531, %c0_167, %c0_168], %534 {strides = array<i32>} : memref<8x2x32xf32, #tpu.memory_space<vmem>>, vector<1x2x32xf32>,
    %535 = tpu.concatenate %487, %530 in 1 : vector<2x32xf32>, vector<2x32xf32> -> vector<2x64xf32>
    %536 = tpu.concatenate %485, %528 in 1 : vector<2x32xf32>, vector<2x32xf32> -> vector<2x64xf32>
    %c6_i32 = arith.constant 6 : i32
    %537 = arith.truncf %535 : vector<2x64xf32> to vector<2x64xbf16>
    %cst_169 = arith.constant dense<0.000000e+00> : vector<2x256xf32>
    %538 = tpu.matmul %537, %0, %cst_169 {dimension_numbers = #tpu.dot_dimension_numbers<[1], [0], [0], [1], [0, 0, 1, 1], [], []>} : vector<2x64xbf16>, vector<64x256xbf16>, vector<2x256xf32> -> vector<2x256xf32>
    %539 = arith.index_cast %c6_i32 : i32 to index
    %c0_170 = arith.constant 0 : index
    %c0_171 = arith.constant 0 : index
    %540 = vector.load %arg1[%539, %c0_170, %c0_171] : memref<8x2x256xf32, #tpu.memory_space<vmem>>, vector<1x2x256xf32>
    %541 = vector.shape_cast %540 : vector<1x2x256xf32> to vector<2x256xf32>
    %542 = vector.extract_strided_slice %541 {offsets = [0, 0], sizes = [2, 128], strides = [1, 1]} : vector<2x256xf32> to vector<2x128xf32>
    %543 = vector.extract_strided_slice %538 {offsets = [0, 0], sizes = [2, 128], strides = [1, 1]} : vector<2x256xf32> to vector<2x128xf32>
    %544 = arith.addf %542, %543 : vector<2x128xf32>
    %545 = vector.extract_strided_slice %536 {offsets = [0, 0], sizes = [2, 32], strides = [1, 1]} : vector<2x64xf32> to vector<2x32xf32>
    %546 = vector.extract_strided_slice %544 {offsets = [0, 0], sizes = [2, 32], strides = [1, 1]} : vector<2x128xf32> to vector<2x32xf32>
    %cst_172 = arith.constant 0.000000e+00 : f32
    %547 = vector.broadcast %cst_172 : f32 to vector<2x32xf32>
    %548 = arith.subf %547, %546 : vector<2x32xf32>
    %549 = math.exp %548 : vector<2x32xf32>
    %cst_173 = arith.constant 1.000000e+00 : f32
    %550 = vector.broadcast %cst_173 : f32 to vector<2x32xf32>
    %551 = arith.addf %550, %549 : vector<2x32xf32>
    %cst_174 = arith.constant 1.000000e+00 : f32
    %552 = vector.broadcast %cst_174 : f32 to vector<2x32xf32>
    %553 = arith.divf %552, %551 : vector<2x32xf32>
    %554 = vector.extract_strided_slice %544 {offsets = [0, 32], sizes = [2, 32], strides = [1, 1]} : vector<2x128xf32> to vector<2x32xf32>
    %cst_175 = arith.constant 0.000000e+00 : f32
    %555 = vector.broadcast %cst_175 : f32 to vector<2x32xf32>
    %556 = arith.subf %555, %554 : vector<2x32xf32>
    %557 = math.exp %556 : vector<2x32xf32>
    %cst_176 = arith.constant 1.000000e+00 : f32
    %558 = vector.broadcast %cst_176 : f32 to vector<2x32xf32>
    %559 = arith.addf %558, %557 : vector<2x32xf32>
    %cst_177 = arith.constant 1.000000e+00 : f32
    %560 = vector.broadcast %cst_177 : f32 to vector<2x32xf32>
    %561 = arith.divf %560, %559 : vector<2x32xf32>
    %562 = vector.extract_strided_slice %544 {offsets = [0, 64], sizes = [2, 32], strides = [1, 1]} : vector<2x128xf32> to vector<2x32xf32>
    %563 = math.tanh %562 : vector<2x32xf32>
    %564 = vector.extract_strided_slice %544 {offsets = [0, 96], sizes = [2, 32], strides = [1, 1]} : vector<2x128xf32> to vector<2x32xf32>
    %cst_178 = arith.constant 0.000000e+00 : f32
    %565 = vector.broadcast %cst_178 : f32 to vector<2x32xf32>
    %566 = arith.subf %565, %564 : vector<2x32xf32>
    %567 = math.exp %566 : vector<2x32xf32>
    %cst_179 = arith.constant 1.000000e+00 : f32
    %568 = vector.broadcast %cst_179 : f32 to vector<2x32xf32>
    %569 = arith.addf %568, %567 : vector<2x32xf32>
    %cst_180 = arith.constant 1.000000e+00 : f32
    %570 = vector.broadcast %cst_180 : f32 to vector<2x32xf32>
    %571 = arith.divf %570, %569 : vector<2x32xf32>
    %572 = arith.mulf %561, %545 : vector<2x32xf32>
    %573 = arith.mulf %553, %563 : vector<2x32xf32>
    %574 = arith.addf %572, %573 : vector<2x32xf32>
    %575 = math.tanh %574 : vector<2x32xf32>
    %576 = arith.mulf %571, %575 : vector<2x32xf32>
    %577 = arith.index_cast %c6_i32 : i32 to index
    %c0_181 = arith.constant 0 : index
    %c0_182 = arith.constant 0 : index
    %578 = vector.load %arg4[%577, %c0_181, %c0_182] : memref<8x2x32xf32, #tpu.memory_space<vmem>>, vector<1x2x32xf32>
    %579 = vector.shape_cast %578 : vector<1x2x32xf32> to vector<2x32xf32>
    %580 = vector.shape_cast %576 : vector<2x32xf32> to vector<1x2x32xf32>
    tpu.vector_store %arg4[%577, %c0_181, %c0_182], %580 {strides = array<i32>} : memref<8x2x32xf32, #tpu.memory_space<vmem>>, vector<1x2x32xf32>,
    %c7_i32_183 = arith.constant 7 : i32
    %581 = arith.subi %c7_i32_183, %c6_i32 : i32
    %582 = arith.index_cast %581 : i32 to index
    %c0_184 = arith.constant 0 : index
    %c0_185 = arith.constant 0 : index
    %583 = vector.load %arg1[%582, %c0_184, %c0_185] : memref<8x2x256xf32, #tpu.memory_space<vmem>>, vector<1x2x256xf32>
    %584 = vector.shape_cast %583 : vector<1x2x256xf32> to vector<2x256xf32>
    %585 = vector.extract_strided_slice %584 {offsets = [0, 128], sizes = [2, 128], strides = [1, 1]} : vector<2x256xf32> to vector<2x128xf32>
    %586 = vector.extract_strided_slice %538 {offsets = [0, 128], sizes = [2, 128], strides = [1, 1]} : vector<2x256xf32> to vector<2x128xf32>
    %587 = arith.addf %585, %586 : vector<2x128xf32>
    %588 = vector.extract_strided_slice %536 {offsets = [0, 32], sizes = [2, 32], strides = [1, 1]} : vector<2x64xf32> to vector<2x32xf32>
    %589 = vector.extract_strided_slice %587 {offsets = [0, 0], sizes = [2, 32], strides = [1, 1]} : vector<2x128xf32> to vector<2x32xf32>
    %cst_186 = arith.constant 0.000000e+00 : f32
    %590 = vector.broadcast %cst_186 : f32 to vector<2x32xf32>
    %591 = arith.subf %590, %589 : vector<2x32xf32>
    %592 = math.exp %591 : vector<2x32xf32>
    %cst_187 = arith.constant 1.000000e+00 : f32
    %593 = vector.broadcast %cst_187 : f32 to vector<2x32xf32>
    %594 = arith.addf %593, %592 : vector<2x32xf32>
    %cst_188 = arith.constant 1.000000e+00 : f32
    %595 = vector.broadcast %cst_188 : f32 to vector<2x32xf32>
    %596 = arith.divf %595, %594 : vector<2x32xf32>
    %597 = vector.extract_strided_slice %587 {offsets = [0, 32], sizes = [2, 32], strides = [1, 1]} : vector<2x128xf32> to vector<2x32xf32>
    %cst_189 = arith.constant 0.000000e+00 : f32
    %598 = vector.broadcast %cst_189 : f32 to vector<2x32xf32>
    %599 = arith.subf %598, %597 : vector<2x32xf32>
    %600 = math.exp %599 : vector<2x32xf32>
    %cst_190 = arith.constant 1.000000e+00 : f32
    %601 = vector.broadcast %cst_190 : f32 to vector<2x32xf32>
    %602 = arith.addf %601, %600 : vector<2x32xf32>
    %cst_191 = arith.constant 1.000000e+00 : f32
    %603 = vector.broadcast %cst_191 : f32 to vector<2x32xf32>
    %604 = arith.divf %603, %602 : vector<2x32xf32>
    %605 = vector.extract_strided_slice %587 {offsets = [0, 64], sizes = [2, 32], strides = [1, 1]} : vector<2x128xf32> to vector<2x32xf32>
    %606 = math.tanh %605 : vector<2x32xf32>
    %607 = vector.extract_strided_slice %587 {offsets = [0, 96], sizes = [2, 32], strides = [1, 1]} : vector<2x128xf32> to vector<2x32xf32>
    %cst_192 = arith.constant 0.000000e+00 : f32
    %608 = vector.broadcast %cst_192 : f32 to vector<2x32xf32>
    %609 = arith.subf %608, %607 : vector<2x32xf32>
    %610 = math.exp %609 : vector<2x32xf32>
    %cst_193 = arith.constant 1.000000e+00 : f32
    %611 = vector.broadcast %cst_193 : f32 to vector<2x32xf32>
    %612 = arith.addf %611, %610 : vector<2x32xf32>
    %cst_194 = arith.constant 1.000000e+00 : f32
    %613 = vector.broadcast %cst_194 : f32 to vector<2x32xf32>
    %614 = arith.divf %613, %612 : vector<2x32xf32>
    %615 = arith.mulf %604, %588 : vector<2x32xf32>
    %616 = arith.mulf %596, %606 : vector<2x32xf32>
    %617 = arith.addf %615, %616 : vector<2x32xf32>
    %618 = math.tanh %617 : vector<2x32xf32>
    %619 = arith.mulf %614, %618 : vector<2x32xf32>
    %620 = arith.index_cast %581 : i32 to index
    %c0_195 = arith.constant 0 : index
    %c0_196 = arith.constant 0 : index
    %621 = vector.load %arg5[%620, %c0_195, %c0_196] : memref<8x2x32xf32, #tpu.memory_space<vmem>>, vector<1x2x32xf32>
    %622 = vector.shape_cast %621 : vector<1x2x32xf32> to vector<2x32xf32>
    %623 = vector.shape_cast %619 : vector<2x32xf32> to vector<1x2x32xf32>
    tpu.vector_store %arg5[%620, %c0_195, %c0_196], %623 {strides = array<i32>} : memref<8x2x32xf32, #tpu.memory_space<vmem>>, vector<1x2x32xf32>,
    %624 = tpu.concatenate %576, %619 in 1 : vector<2x32xf32>, vector<2x32xf32> -> vector<2x64xf32>
    %625 = tpu.concatenate %574, %617 in 1 : vector<2x32xf32>, vector<2x32xf32> -> vector<2x64xf32>
    %c7_i32_197 = arith.constant 7 : i32
    %626 = arith.truncf %624 : vector<2x64xf32> to vector<2x64xbf16>
    %cst_198 = arith.constant dense<0.000000e+00> : vector<2x256xf32>
    %627 = tpu.matmul %626, %0, %cst_198 {dimension_numbers = #tpu.dot_dimension_numbers<[1], [0], [0], [1], [0, 0, 1, 1], [], []>} : vector<2x64xbf16>, vector<64x256xbf16>, vector<2x256xf32> -> vector<2x256xf32>
    %628 = arith.index_cast %c7_i32_197 : i32 to index
    %c0_199 = arith.constant 0 : index
    %c0_200 = arith.constant 0 : index
    %629 = vector.load %arg1[%628, %c0_199, %c0_200] : memref<8x2x256xf32, #tpu.memory_space<vmem>>, vector<1x2x256xf32>
    %630 = vector.shape_cast %629 : vector<1x2x256xf32> to vector<2x256xf32>
    %631 = vector.extract_strided_slice %630 {offsets = [0, 0], sizes = [2, 128], strides = [1, 1]} : vector<2x256xf32> to vector<2x128xf32>
    %632 = vector.extract_strided_slice %627 {offsets = [0, 0], sizes = [2, 128], strides = [1, 1]} : vector<2x256xf32> to vector<2x128xf32>
    %633 = arith.addf %631, %632 : vector<2x128xf32>
    %634 = vector.extract_strided_slice %625 {offsets = [0, 0], sizes = [2, 32], strides = [1, 1]} : vector<2x64xf32> to vector<2x32xf32>
    %635 = vector.extract_strided_slice %633 {offsets = [0, 0], sizes = [2, 32], strides = [1, 1]} : vector<2x128xf32> to vector<2x32xf32>
    %cst_201 = arith.constant 0.000000e+00 : f32
    %636 = vector.broadcast %cst_201 : f32 to vector<2x32xf32>
    %637 = arith.subf %636, %635 : vector<2x32xf32>
    %638 = math.exp %637 : vector<2x32xf32>
    %cst_202 = arith.constant 1.000000e+00 : f32
    %639 = vector.broadcast %cst_202 : f32 to vector<2x32xf32>
    %640 = arith.addf %639, %638 : vector<2x32xf32>
    %cst_203 = arith.constant 1.000000e+00 : f32
    %641 = vector.broadcast %cst_203 : f32 to vector<2x32xf32>
    %642 = arith.divf %641, %640 : vector<2x32xf32>
    %643 = vector.extract_strided_slice %633 {offsets = [0, 32], sizes = [2, 32], strides = [1, 1]} : vector<2x128xf32> to vector<2x32xf32>
    %cst_204 = arith.constant 0.000000e+00 : f32
    %644 = vector.broadcast %cst_204 : f32 to vector<2x32xf32>
    %645 = arith.subf %644, %643 : vector<2x32xf32>
    %646 = math.exp %645 : vector<2x32xf32>
    %cst_205 = arith.constant 1.000000e+00 : f32
    %647 = vector.broadcast %cst_205 : f32 to vector<2x32xf32>
    %648 = arith.addf %647, %646 : vector<2x32xf32>
    %cst_206 = arith.constant 1.000000e+00 : f32
    %649 = vector.broadcast %cst_206 : f32 to vector<2x32xf32>
    %650 = arith.divf %649, %648 : vector<2x32xf32>
    %651 = vector.extract_strided_slice %633 {offsets = [0, 64], sizes = [2, 32], strides = [1, 1]} : vector<2x128xf32> to vector<2x32xf32>
    %652 = math.tanh %651 : vector<2x32xf32>
    %653 = vector.extract_strided_slice %633 {offsets = [0, 96], sizes = [2, 32], strides = [1, 1]} : vector<2x128xf32> to vector<2x32xf32>
    %cst_207 = arith.constant 0.000000e+00 : f32
    %654 = vector.broadcast %cst_207 : f32 to vector<2x32xf32>
    %655 = arith.subf %654, %653 : vector<2x32xf32>
    %656 = math.exp %655 : vector<2x32xf32>
    %cst_208 = arith.constant 1.000000e+00 : f32
    %657 = vector.broadcast %cst_208 : f32 to vector<2x32xf32>
    %658 = arith.addf %657, %656 : vector<2x32xf32>
    %cst_209 = arith.constant 1.000000e+00 : f32
    %659 = vector.broadcast %cst_209 : f32 to vector<2x32xf32>
    %660 = arith.divf %659, %658 : vector<2x32xf32>
    %661 = arith.mulf %650, %634 : vector<2x32xf32>
    %662 = arith.mulf %642, %652 : vector<2x32xf32>
    %663 = arith.addf %661, %662 : vector<2x32xf32>
    %664 = math.tanh %663 : vector<2x32xf32>
    %665 = arith.mulf %660, %664 : vector<2x32xf32>
    %666 = arith.index_cast %c7_i32_197 : i32 to index
    %c0_210 = arith.constant 0 : index
    %c0_211 = arith.constant 0 : index
    %667 = vector.load %arg4[%666, %c0_210, %c0_211] : memref<8x2x32xf32, #tpu.memory_space<vmem>>, vector<1x2x32xf32>
    %668 = vector.shape_cast %667 : vector<1x2x32xf32> to vector<2x32xf32>
    %669 = vector.shape_cast %665 : vector<2x32xf32> to vector<1x2x32xf32>
    tpu.vector_store %arg4[%666, %c0_210, %c0_211], %669 {strides = array<i32>} : memref<8x2x32xf32, #tpu.memory_space<vmem>>, vector<1x2x32xf32>,
    %c7_i32_212 = arith.constant 7 : i32
    %670 = arith.subi %c7_i32_212, %c7_i32_197 : i32
    %671 = arith.index_cast %670 : i32 to index
    %c0_213 = arith.constant 0 : index
    %c0_214 = arith.constant 0 : index
    %672 = vector.load %arg1[%671, %c0_213, %c0_214] : memref<8x2x256xf32, #tpu.memory_space<vmem>>, vector<1x2x256xf32>
    %673 = vector.shape_cast %672 : vector<1x2x256xf32> to vector<2x256xf32>
    %674 = vector.extract_strided_slice %673 {offsets = [0, 128], sizes = [2, 128], strides = [1, 1]} : vector<2x256xf32> to vector<2x128xf32>
    %675 = vector.extract_strided_slice %627 {offsets = [0, 128], sizes = [2, 128], strides = [1, 1]} : vector<2x256xf32> to vector<2x128xf32>
    %676 = arith.addf %674, %675 : vector<2x128xf32>
    %677 = vector.extract_strided_slice %625 {offsets = [0, 32], sizes = [2, 32], strides = [1, 1]} : vector<2x64xf32> to vector<2x32xf32>
    %678 = vector.extract_strided_slice %676 {offsets = [0, 0], sizes = [2, 32], strides = [1, 1]} : vector<2x128xf32> to vector<2x32xf32>
    %cst_215 = arith.constant 0.000000e+00 : f32
    %679 = vector.broadcast %cst_215 : f32 to vector<2x32xf32>
    %680 = arith.subf %679, %678 : vector<2x32xf32>
    %681 = math.exp %680 : vector<2x32xf32>
    %cst_216 = arith.constant 1.000000e+00 : f32
    %682 = vector.broadcast %cst_216 : f32 to vector<2x32xf32>
    %683 = arith.addf %682, %681 : vector<2x32xf32>
    %cst_217 = arith.constant 1.000000e+00 : f32
    %684 = vector.broadcast %cst_217 : f32 to vector<2x32xf32>
    %685 = arith.divf %684, %683 : vector<2x32xf32>
    %686 = vector.extract_strided_slice %676 {offsets = [0, 32], sizes = [2, 32], strides = [1, 1]} : vector<2x128xf32> to vector<2x32xf32>
    %cst_218 = arith.constant 0.000000e+00 : f32
    %687 = vector.broadcast %cst_218 : f32 to vector<2x32xf32>
    %688 = arith.subf %687, %686 : vector<2x32xf32>
    %689 = math.exp %688 : vector<2x32xf32>
    %cst_219 = arith.constant 1.000000e+00 : f32
    %690 = vector.broadcast %cst_219 : f32 to vector<2x32xf32>
    %691 = arith.addf %690, %689 : vector<2x32xf32>
    %cst_220 = arith.constant 1.000000e+00 : f32
    %692 = vector.broadcast %cst_220 : f32 to vector<2x32xf32>
    %693 = arith.divf %692, %691 : vector<2x32xf32>
    %694 = vector.extract_strided_slice %676 {offsets = [0, 64], sizes = [2, 32], strides = [1, 1]} : vector<2x128xf32> to vector<2x32xf32>
    %695 = math.tanh %694 : vector<2x32xf32>
    %696 = vector.extract_strided_slice %676 {offsets = [0, 96], sizes = [2, 32], strides = [1, 1]} : vector<2x128xf32> to vector<2x32xf32>
    %cst_221 = arith.constant 0.000000e+00 : f32
    %697 = vector.broadcast %cst_221 : f32 to vector<2x32xf32>
    %698 = arith.subf %697, %696 : vector<2x32xf32>
    %699 = math.exp %698 : vector<2x32xf32>
    %cst_222 = arith.constant 1.000000e+00 : f32
    %700 = vector.broadcast %cst_222 : f32 to vector<2x32xf32>
    %701 = arith.addf %700, %699 : vector<2x32xf32>
    %cst_223 = arith.constant 1.000000e+00 : f32
    %702 = vector.broadcast %cst_223 : f32 to vector<2x32xf32>
    %703 = arith.divf %702, %701 : vector<2x32xf32>
    %704 = arith.mulf %693, %677 : vector<2x32xf32>
    %705 = arith.mulf %685, %695 : vector<2x32xf32>
    %706 = arith.addf %704, %705 : vector<2x32xf32>
    %707 = math.tanh %706 : vector<2x32xf32>
    %708 = arith.mulf %703, %707 : vector<2x32xf32>
    %709 = arith.index_cast %670 : i32 to index
    %c0_224 = arith.constant 0 : index
    %c0_225 = arith.constant 0 : index
    %710 = vector.load %arg5[%709, %c0_224, %c0_225] : memref<8x2x32xf32, #tpu.memory_space<vmem>>, vector<1x2x32xf32>
    %711 = vector.shape_cast %710 : vector<1x2x32xf32> to vector<2x32xf32>
    %712 = vector.shape_cast %708 : vector<2x32xf32> to vector<1x2x32xf32>
    tpu.vector_store %arg5[%709, %c0_224, %c0_225], %712 {strides = array<i32>} : memref<8x2x32xf32, #tpu.memory_space<vmem>>, vector<1x2x32xf32>,
    %713 = tpu.concatenate %665, %708 in 1 : vector<2x32xf32>, vector<2x32xf32> -> vector<2x64xf32>
    %714 = tpu.concatenate %663, %706 in 1 : vector<2x32xf32>, vector<2x32xf32> -> vector<2x64xf32>
    %c8_i32 = arith.constant 8 : i32
    %c0_226 = arith.constant 0 : index
    %c0_227 = arith.constant 0 : index
    %c0_228 = arith.constant 0 : index
    %715 = vector.load %arg4[%c0_226, %c0_227, %c0_228] : memref<8x2x32xf32, #tpu.memory_space<vmem>>, vector<8x2x32xf32>
    %c0_229 = arith.constant 0 : index
    %c0_230 = arith.constant 0 : index
    %c0_231 = arith.constant 0 : index
    %716 = vector.load %arg5[%c0_229, %c0_230, %c0_231] : memref<8x2x32xf32, #tpu.memory_space<vmem>>, vector<8x2x32xf32>
    %717 = tpu.concatenate %715, %716 in 2 : vector<8x2x32xf32>, vector<8x2x32xf32> -> vector<8x2x64xf32>
    %c0_232 = arith.constant 0 : index
    %c0_233 = arith.constant 0 : index
    %c0_234 = arith.constant 0 : index
    %718 = vector.load %arg3[%c0_232, %c0_233, %c0_234] : memref<8x2x64xf32, #tpu.memory_space<vmem>>, vector<8x2x64xf32>
    tpu.vector_store %arg3[%c0_232, %c0_233, %c0_234], %717 {strides = array<i32>} : memref<8x2x64xf32, #tpu.memory_space<vmem>>, vector<8x2x64xf32>,
    return
  }
  func.func @transform_0(%arg0: i32) -> (i32, i32, i32) {
    %c0_i32 = arith.constant 0 : i32
    %c0_i32_0 = arith.constant 0 : i32
    %c0_i32_1 = arith.constant 0 : i32
    %c0_i32_2 = arith.constant 0 : i32
    return %c0_i32, %c0_i32_0, %c0_i32_1 : i32, i32, i32
  }
  func.func @transform_1(%arg0: i32) -> (i32, i32) {
    %c0_i32 = arith.constant 0 : i32
    %c0_i32_0 = arith.constant 0 : i32
    %c0_i32_1 = arith.constant 0 : i32
    return %c0_i32, %c0_i32_0 : i32, i32
  }
  func.func @transform_2(%arg0: i32) -> (i32, i32, i32) {
    %c0_i32 = arith.constant 0 : i32
    %c0_i32_0 = arith.constant 0 : i32
    %c0_i32_1 = arith.constant 0 : i32
    %c0_i32_2 = arith.constant 0 : i32
    return %c0_i32, %c0_i32_0, %c0_i32_1 : i32, i32, i32
  }
}

</mosaic_0001>

<bundles_post_ra>
// kernel: lstm_forward.4
= control target key start
LH: loop header
LB: loop body
LE: loop exit
PB: predicated region body
PF: predicated region fallthrough
CT: control target
= control target key end

     0   :  { %v158_v1 = vmov 0   ;;  %vm58_vm0 = vcmask 261120   ;;  %v122_v6 = vlaneseq  ;;  %s209_s1 = inlined_call_operand.vmem [shape: bf16[32,256], index: 1, kind: input, shape index: {}]   ;;  %s210_s0 = inlined_call_operand.vmem [shape: bf16[16,32], index: 0, kind: input, shape index: {}]   ;;  %s211_s2 = inlined_call_operand.vmem [shape: f32[1,256], index: 2, kind: input, shape index: {}]   ;;  %s212_s3 = inlined_call_operand.vmem [shape: f32[16,256], index: 3, kind: output, shape index: {}]  }
   0x1   :  { %v151_v0 = vld [vmem:[%s209_s1 + $0x14] ss:$8 sps:$4 sm:$0xff]   ;;  %94 = vmatprep.mubr.bf16.mxu0 %v158_v1  ;;  %v153_v2 = vld [vmem:[%s209_s1 + $0x10] ss:$8 sps:$4 sm:$0xff]   ;;  %v154_v3 = vld [vmem:[%s209_s1 + $0x4] ss:$8 sps:$4 sm:$0xff]  }
   0x2   :  { %74 = vmatprep.subr.bf16.mxu0 %v151_v0  ;;  %v156_v4 = vld [vmem:[%s209_s1] ss:$8 sps:$4 sm:$0xff]   ;;  %v123_v7 = vshrl.u32 %v122_v6, 7 }
   0x3   :  { %75 = vmatpush1.bf16.msra.mxu0 %v153_v2  ;;  %v157_v5 = vld [vmem:[%s210_s0] sm:$0xff]  }
   0x4   :  { %76 = vmatprep.subr.bf16.mxu0 %v154_v3  ;;  %v124_v8 = vsub.s32 0, %v123_v7  ;;  %v120_v9 = vld [vmem:[%s211_s2] sm:$0x3]  ;;  %v128_v10 = vsub.s32 1, %v123_v7 }
   0x6   :  { %v125_v11 = vrot.slane %v120_v9, %v124_v8  ;;  %v129_v12 = vrot.slane %v120_v9, %v128_v10 }
   0x7   :  { %77 = vmatpush1.bf16.msra.mxu0 %v156_v4 }
   0xa   :  { %149 = vmatmul.mubr.msk.bf16.vlgmr.msra.gmra.mxu0 %vm58_vm0, %v157_v5 }
  0xca   :  { %v96_v13 = vpop.f32.mrf.mxu0 }
  0xcb   :  { %v132_v14 = vadd.f32 %v125_v11, %v96_v13 }
  0xcc   :  { %v98_v15 = vpop.f32.mrf.mxu0 }
  0xcd   :  { %136 = vst [vmem:[%s212_s3] sm:$0xff] %v132_v14  ;;  %v133_v16 = vadd.f32 %v129_v12, %v98_v15 }
  0xce   :  { %v100_v17 = vpop.f32.mrf.mxu0 }
  0xcf   :  { %137 = vst [vmem:[%s212_s3 + $0x8] sm:$0xff] %v133_v16  ;;  %v134_v18 = vadd.f32 %v125_v11, %v100_v17 }
  0xd0   :  { %v102_v19 = vpop.f32.mrf.mxu0 }
  0xd1   :  { %138 = vst [vmem:[%s212_s3 + $0x10] sm:$0xff] %v134_v18  ;;  %v135_v20 = vadd.f32 %v129_v12, %v102_v19 }
  0xd3   :  { %139 = vst [vmem:[%s212_s3 + $0x18] sm:$0xff] %v135_v20 }

// kernel: lstm_forward.6
= control target key start
LH: loop header
LB: loop body
LE: loop exit
PB: predicated region body
PF: predicated region fallthrough
CT: control target
= control target key end

     0   :  { %v192_v1 = vmov 0   ;;  %vm82_vm0 = vcmask 523264   ;;  %v146_v10 = vlaneseq  ;;  %s255_s1 = inlined_call_operand.vmem [shape: bf16[64,256], index: 1, kind: input, shape index: {}]   ;;  %s256_s0 = inlined_call_operand.vmem [shape: bf16[16,64], index: 0, kind: input, shape index: {}]   ;;  %s257_s2 = inlined_call_operand.vmem [shape: f32[1,256], index: 2, kind: input, shape index: {}]   ;;  %s258_s3 = inlined_call_operand.vmem [shape: f32[16,256], index: 3, kind: output, shape index: {}]  }
   0x1   :  { %v179_v0 = vld [vmem:[%s255_s1 + $0x34] ss:$8 sps:$4 sm:$0xff]   ;;  %118 = vmatprep.mubr.bf16.mxu0 %v192_v1  ;;  %v181_v2 = vld [vmem:[%s255_s1 + $0x30] ss:$8 sps:$4 sm:$0xff]   ;;  %v182_v3 = vld [vmem:[%s255_s1 + $0x24] ss:$8 sps:$4 sm:$0xff]  }
   0x2   :  { %94 = vmatprep.subr.bf16.mxu0 %v179_v0  ;;  %v184_v4 = vld [vmem:[%s255_s1 + $0x20] ss:$8 sps:$4 sm:$0xff]   ;;  %v185_v5 = vld [vmem:[%s255_s1 + $0x14] ss:$8 sps:$4 sm:$0xff]   ;;  %v187_v6 = vld [vmem:[%s255_s1 + $0x10] ss:$8 sps:$4 sm:$0xff]  }
   0x3   :  { %95 = vmatpush1.bf16.msra.mxu0 %v181_v2  ;;  %v188_v7 = vld [vmem:[%s255_s1 + $0x4] ss:$8 sps:$4 sm:$0xff]   ;;  %v190_v8 = vld [vmem:[%s255_s1] ss:$8 sps:$4 sm:$0xff]   ;;  %v147_v11 = vshrl.u32 %v146_v10, 7 }
   0x4   :  { %96 = vmatprep.subr.bf16.mxu0 %v182_v3  ;;  %v191_v9 = vld [vmem:[%s256_s0] sm:$0xff]  }
   0x5   :  { %v148_v12 = vsub.s32 0, %v147_v11  ;;  %v144_v13 = vld [vmem:[%s257_s2] sm:$0x3]  ;;  %v152_v14 = vsub.s32 1, %v147_v11 }
   0x7   :  { %97 = vmatpush1.bf16.msra.mxu0 %v184_v4  ;;  %v149_v15 = vrot.slane %v144_v13, %v148_v12  ;;  %v153_v16 = vrot.slane %v144_v13, %v152_v14 }
   0x8   :  { %98 = vmatprep.subr.bf16.mxu0 %v185_v5 }
   0xb   :  { %99 = vmatpush1.bf16.msra.mxu0 %v187_v6 }
   0xc   :  { %100 = vmatprep.subr.bf16.mxu0 %v188_v7 }
   0xf   :  { %101 = vmatpush1.bf16.msra.mxu0 %v190_v8 }
  0x12   :  { %177 = vmatmul.mubr.msk.bf16.vlgmr.msra.gmra.mxu0 %vm82_vm0, %v191_v9 }
  0xd2   :  { %v120_v17 = vpop.f32.mrf.mxu0 }
  0xd3   :  { %v156_v18 = vadd.f32 %v149_v15, %v120_v17 }
  0xd4   :  { %v122_v19 = vpop.f32.mrf.mxu0 }
  0xd5   :  { %160 = vst [vmem:[%s258_s3] sm:$0xff] %v156_v18  ;;  %v157_v20 = vadd.f32 %v153_v16, %v122_v19 }
  0xd6   :  { %v124_v21 = vpop.f32.mrf.mxu0 }
  0xd7   :  { %161 = vst [vmem:[%s258_s3 + $0x8] sm:$0xff] %v157_v20  ;;  %v158_v22 = vadd.f32 %v149_v15, %v124_v21 }
  0xd8   :  { %v126_v23 = vpop.f32.mrf.mxu0 }
  0xd9   :  { %162 = vst [vmem:[%s258_s3 + $0x10] sm:$0xff] %v158_v22  ;;  %v159_v24 = vadd.f32 %v153_v16, %v126_v23 }
  0xdb   :  { %163 = vst [vmem:[%s258_s3 + $0x18] sm:$0xff] %v159_v24 }

// kernel: lstm_forward.5
= control target key start
LH: loop header
LB: loop body
LE: loop exit
PB: predicated region body
PF: predicated region fallthrough
CT: control target
= control target key end

     0   :  { %v1507_v1 = vmov 0   ;;  %s1508_s28 = smov 64   ;;  %s1509_s29 = smov 32   ;;  %v1510_v42 = vmov 1983009808   ;;  %v135_v44 = vlaneseq  ;;  %vm142_vm0 = vcmask 254976   ;;  %s1918_s1 = inlined_call_operand.vmem [shape: bf16[64,256], index: 1, kind: input, shape index: {}]   ;;  %s1919_s0 = inlined_call_operand.vmem [shape: f32[8,2,256], index: 0, kind: input, shape index: {}]   ;;  %s1920_s2 = inlined_call_operand.vmem [shape: f32[8,2,64], index: 2, kind: output, shape index: {}]  }
   0x1   :  { %v1530_v0 = vld [vmem:[%s1918_s1 + $0x34] ss:$8 sps:$4 sm:$0xff]   ;;  %96 = vmatprep.mubr.bf16.mxu0 %v1507_v1  ;;  %240 = vmatprep.mubr.bf16.mxu1 %v1507_v1  ;;  %v1537_v2 = vld [vmem:[%s1918_s1 + $0x30] ss:$8 sps:$4 sm:$0xff]   ;;  %v1543_v3 = vld [vmem:[%s1918_s1 + $0x24] ss:$8 sps:$4 sm:$0xff]   ;;  %v133_v43 = vunpack.c.l.s4 %v1510_v42 }
   0x2   :  { %72 = vmatprep.subr.bf16.mxu0 %v1530_v0  ;;  %216 = vmatprep.subr.bf16.mxu1 %v1530_v0  ;;  %v1550_v4 = vld [vmem:[%s1918_s1 + $0x20] ss:$8 sps:$4 sm:$0xff]   ;;  %v1557_v5 = vld [vmem:[%s1918_s1 + $0x14] ss:$8 sps:$4 sm:$0xff]   ;;  %v1564_v6 = vld [vmem:[%s1918_s1 + $0x10] ss:$8 sps:$4 sm:$0xff]  }
   0x3   :  { %73 = vmatpush1.bf16.msra.mxu0 %v1537_v2  ;;  %217 = vmatpush1.bf16.msra.mxu1 %v1537_v2  ;;  %v1571_v7 = vld [vmem:[%s1918_s1 + $0x4] ss:$8 sps:$4 sm:$0xff]   ;;  %v1578_v8 = vld [vmem:[%s1918_s1] ss:$8 sps:$4 sm:$0xff]   ;;  %v1341_v9 = vld [vmem:[%s1919_s0 + $0x1c] sm:$0xf]  ;;  %v134_v45 = vunpack.c.0.s8 %v133_v43 }
   0x4   :  { %74 = vmatprep.subr.bf16.mxu0 %v1543_v3  ;;  %218 = vmatprep.subr.bf16.mxu1 %v1543_v3  ;;  %v105_v10 = vld [vmem:[%s1919_s0] sm:$0xf]  ;;  %v147_v11 = vrot.slane %v1341_v9, 2  ;;  %v136_v46 = vshrl.u32 %v135_v44, 7  ;;  %s1511_s30 = smov 96   ;;  %vm190_vm1 = vcmask 261120  }
   0x5   :  { %vm60_vm2 = vcmask 523264   ;;  %v1344_v59 = vld [vmem:[%s1919_s0 + $0x18] sm:$0xf]  ;;  %v1343_v60 = vld [vmem:[%s1919_s0 + $0x4] sm:$0xf]  ;;  %vm1320_vm3 = vcmask 517120  }
   0x6   :  { %v1609_v48 = vsub.s32 %v134_v45, %v136_v46  ;;  %v303_v61 = vrot.slane %v1344_v59, 2 }
   0x7   :  { %75 = vmatpush1.bf16.msra.mxu0 %v1550_v4  ;;  %219 = vmatpush1.bf16.msra.mxu1 %v1550_v4 }
   0x8   :  { %76 = vmatprep.subr.bf16.mxu0 %v1557_v5  ;;  %220 = vmatprep.subr.bf16.mxu1 %v1557_v5 }
   0xb   :  { %77 = vmatpush1.bf16.msra.mxu0 %v1564_v6  ;;  %221 = vmatpush1.bf16.msra.mxu1 %v1564_v6 }
   0xc   :  { %78 = vmatprep.subr.bf16.mxu0 %v1571_v7  ;;  %222 = vmatprep.subr.bf16.mxu1 %v1571_v7 }
   0xf   :  { %79 = vmatpush1.bf16.msra.mxu0 %v1578_v8  ;;  %223 = vmatpush1.bf16.msra.mxu1 %v1578_v8 }
  0x10   :  { %371 = vmatprep.subr.bf16.mxu0 %v1530_v0  ;;  %526 = vmatprep.subr.bf16.mxu1 %v1530_v0 }
  0x12   :  { %97 = vmatmul.mubr.bf16.vlgmr.msra.gmra.mxu0 %v1507_v1 }
  0x13   :  { %372 = vmatpush1.bf16.msra.mxu0 %v1537_v2  ;;  %395 = vmatprep.mubr.bf16.mxu0 %v1507_v1 }
  0x14   :  { %373 = vmatprep.subr.bf16.mxu0 %v1543_v3 }
  0x17   :  { %374 = vmatpush1.bf16.msra.mxu0 %v1550_v4 }
  0x18   :  { %375 = vmatprep.subr.bf16.mxu0 %v1557_v5 }
  0x1b   :  { %376 = vmatpush1.bf16.msra.mxu0 %v1564_v6 }
  0x1c   :  { %377 = vmatprep.subr.bf16.mxu0 %v1571_v7 }
  0x1f   :  { %378 = vmatpush1.bf16.msra.mxu0 %v1578_v8 }
  0x20   :  { %681 = vmatprep.subr.bf16.mxu0 %v1530_v0 }
  0xd2   :  { %v98_v12 = vpop.f32.mrf.mxu0 }
  0xd3   :  { %v106_v13 = vadd.f32 %v105_v10, %v98_v12 }
  0xd4   :  { %v100_v14 = vpop.f32.mrf.mxu0 }
  0xd5   :  { %1379 = vtanh.f32 %v106_v13  ;;  %v149_v15 = vadd.f32 %v147_v11, %v100_v14  ;;  %v107_v20 = vsub.f32 0.0, %v106_v13 }
  0xd6   :  { %v102_v16 = vpop.f32.mrf.mxu0 }
  0xd7   :  { %1381 = vtanh.f32 %v149_v15  ;;  %v108_v21 = vmul.f32 1.442695, %v107_v20  ;;  %v150_v22 = vsub.f32 0.0, %v149_v15 }
  0xd8   :  { %v103_v17 = vpop.f32.mrf.mxu0 }
  0xd9   :  { %1383 = vpow2.f32 %v108_v21  ;;  %v151_v23 = vmul.f32 1.442695, %v150_v22 }
  0xdb   :  { %1385 = vpow2.f32 %v151_v23 }
  0xe2   :  { %v1380_v18 = vpop.eup %1379 }
  0xe3   :  { %116 = vrot.lane.b32.xlu0 %v1380_v18, %s1508_s28 }
  0xe4   :  { %v1382_v19 = vpop.eup %1381 }
  0xe6   :  { %v1384_v24 = vpop.eup %1383 }
  0xe7   :  { %159 = vrot.lane.b32.xlu0 %v1382_v19, %s1508_s28  ;;  %v110_v25 = vadd.f32 1.0, %v1384_v24 }
  0xe8   :  { %v1386_v26 = vpop.eup %1385 }
  0xe9   :  { %1387 = vrcp.f32 %v110_v25  ;;  %v153_v27 = vadd.f32 1.0, %v1386_v26 }
  0xeb   :  { %1389 = vrcp.f32 %v153_v27 }
  0xf6   :  { %v1388_v28 = vpop.eup %1387 }
  0xf7   :  { %v114_v34 = vmul.f32 0.0, %v1388_v28 }
  0xf8   :  { %v1390_v31 = vpop.eup %1389 }
  0xf9   :  { %v157_v37 = vmul.f32 0.0, %v1390_v31 }
 0x155   :  { %v117_v29 = vpop.permute.xlu0 %116 }
 0x156   :  { %v119_v30 = vmul.f32 %v1388_v28, %v117_v29 }
 0x158   :  { %121 = vrot.lane.b32.xlu1 %v119_v30, %s1509_s29 }
 0x159   :  { %v160_v32 = vpop.permute.xlu0 %159 }
 0x15a   :  { %v162_v33 = vmul.f32 %v1390_v31, %v160_v32 }
 0x15c   :  { %164 = vrot.lane.b32.xlu1 %v162_v33, %s1509_s29 }
 0x1ca   :  { %v122_v35 = vpop.permute.xlu1 %121 }
 0x1cb   :  { %v124_v36 = vadd.f32 %v122_v35, %v114_v34 }
 0x1cd   :  { %1391 = vtanh.f32 %v124_v36  ;;  %v199_v53 = vrot.slane %v124_v36, %v1609_v48 }
 0x1ce   :  { %v165_v38 = vpop.permute.xlu1 %164 }
 0x1cf   :  { %v167_v39 = vadd.f32 %v165_v38, %v157_v37 }
 0x1d1   :  { %1393 = vtanh.f32 %v167_v39 }
 0x1da   :  { %v1392_v40 = vpop.eup %1391 }
 0x1db   :  { %127 = vrot.lane.b32.xlu0 %v1392_v40, %s1508_s28 }
 0x1de   :  { %v1394_v41 = vpop.eup %1393 }
 0x1df   :  { %170 = vrot.lane.b32.xlu1 %v1394_v41, %s1508_s28 }
 0x24d   :  { %v128_v47 = vpop.permute.xlu0 %127 }
 0x24e   :  { %v130_v49 = vmul.f32 %v1388_v28, %v128_v47 }
 0x250   :  { %v138_v50 = vrot.slane %v130_v49, %v1609_v48 }
 0x251   :  { %v171_v51 = vpop.permute.xlu1 %170 }
 0x252   :  { %v173_v52 = vmul.f32 %v1390_v31, %v171_v51  ;;  %139 = vrot.lane.b32.xlu0 %v138_v50, %s1509_s29 }
 0x254   :  { %v1615_v54 = vrot.slane %v173_v52, %v1609_v48 }
 0x256   :  { %187 = vrot.lane.b32.xlu1 %v1615_v54, %s1508_s28  ;;  %200 = vrot.lane.b32.xlu0 %v199_v53, %s1511_s30  ;;  %v1347_v53 = vld [vmem:[%s1919_s0 + $0x14] sm:$0xf] }
 0x2c4   :  { %v140_v55 = vpop.permute.xlu0 %139 }
 0x2c5   :  { %143 = vst.msk [vmem:[#allocation2] sm:$0x3] %vm142_vm0, %v140_v55 }
 0x2c8   :  { %v188_v56 = vpop.permute.xlu1 %187  ;;  %v201_v13 = vpop.permute.xlu0 %200 }
 0x2c9   :  { %v191_v57 = vsel %vm190_vm1, %v140_v55, %v188_v56  ;;  %v203_v15 = vsel %vm190_vm1, %v201_v13, %v167_v39  ;;  %v1346_v55 = vld [vmem:[%s1919_s0 + $0x8] sm:$0xf]  ;;  %v458_v56 = vrot.slane %v1347_v53, 2 }
 0x2ca   :  { %v204_v58 = vpack.c.bf16 %v191_v57, %v191_v57  ;;  %v266_v17 = vrot.slane %v203_v15, %v1609_v48 }
 0x2cc   :  { %1342 = vmatmul.mubr.msk.bf16.vlgmr.msra.gmra.mxu1 %vm60_vm2, %v204_v58 }
 0x2cd   :  { %527 = vmatpush1.bf16.msra.mxu1 %v1537_v2  ;;  %550 = vmatprep.mubr.bf16.mxu1 %v1507_v1 }
 0x2ce   :  { %528 = vmatprep.subr.bf16.mxu1 %v1543_v3 }
 0x2d1   :  { %529 = vmatpush1.bf16.msra.mxu1 %v1550_v4 }
 0x2d2   :  { %530 = vmatprep.subr.bf16.mxu1 %v1557_v5 }
 0x2d5   :  { %531 = vmatpush1.bf16.msra.mxu1 %v1564_v6 }
 0x2d6   :  { %532 = vmatprep.subr.bf16.mxu1 %v1571_v7 }
 0x2d9   :  { %533 = vmatpush1.bf16.msra.mxu1 %v1578_v8 }
 0x2da   :  { %834 = vmatprep.subr.bf16.mxu1 %v1530_v0 }
 0x38c   :  { %v242_v62 = vpop.f32.mrf.mxu1 }
 0x38d   :  { %v251_v63 = vadd.f32 %v1343_v60, %v242_v62 }
 0x38e   :  { %v244_v9 = vpop.f32.mrf.mxu1 }
 0x38f   :  { %1395 = vtanh.f32 %v251_v63  ;;  %v305_v10 = vadd.f32 %v303_v61, %v244_v9  ;;  %v252_v18 = vsub.f32 0.0, %v251_v63 }
 0x390   :  { %v246_v11 = vpop.f32.mrf.mxu1 }
 0x391   :  { %1397 = vtanh.f32 %v305_v10  ;;  %v306_v19 = vsub.f32 0.0, %v305_v10  ;;  %v253_v20 = vmul.f32 1.442695, %v252_v18 }
 0x392   :  { %v247_v12 = vpop.f32.mrf.mxu1 }
 0x393   :  { %v307_v21 = vmul.f32 1.442695, %v306_v19  ;;  %1399 = vpow2.f32 %v253_v20 }
 0x395   :  { %1401 = vpow2.f32 %v307_v21 }
 0x39c   :  { %v1396_v14 = vpop.eup %1395 }
 0x39d   :  { %272 = vrot.lane.b32.xlu1 %v1396_v14, %s1508_s28 }
 0x39e   :  { %v1398_v16 = vpop.eup %1397 }
 0x39f   :  { %315 = vrot.lane.b32.xlu0 %v1398_v16, %s1508_s28 }
 0x3a0   :  { %v1400_v22 = vpop.eup %1399 }
 0x3a1   :  { %267 = vrot.lane.b32.xlu1 %v266_v17, %s1509_s29  ;;  %v255_v24 = vadd.f32 1.0, %v1400_v22 }
 0x3a2   :  { %v1402_v23 = vpop.eup %1401 }
 0x3a3   :  { %v309_v25 = vadd.f32 1.0, %v1402_v23  ;;  %1403 = vrcp.f32 %v255_v24 }
 0x3a5   :  { %1405 = vrcp.f32 %v309_v25 }
 0x3b0   :  { %v1404_v26 = vpop.eup %1403 }
 0x3b2   :  { %v1406_v29 = vpop.eup %1405 }
 0x3b3   :  { %v313_v36 = vmul.f32 %v1406_v29, %v203_v15 }
 0x40f   :  { %v273_v27 = vpop.permute.xlu1 %272 }
 0x410   :  { %v275_v28 = vmul.f32 %v1404_v26, %v273_v27 }
 0x411   :  { %v316_v30 = vpop.permute.xlu0 %315 }
 0x412   :  { %v318_v31 = vmul.f32 %v1406_v29, %v316_v30  ;;  %277 = vrot.lane.b32.xlu0 %v275_v28, %s1509_s29 }
 0x413   :  { %v268_v32 = vpop.permute.xlu1 %267 }
 0x414   :  { %320 = vrot.lane.b32.xlu1 %v318_v31, %s1509_s29  ;;  %v270_v33 = vmul.f32 %v1404_v26, %v268_v32 }
 0x484   :  { %v278_v34 = vpop.permute.xlu0 %277 }
 0x485   :  { %v280_v35 = vadd.f32 %v278_v34, %v270_v33 }
 0x486   :  { %v321_v37 = vpop.permute.xlu1 %320 }
 0x487   :  { %1407 = vtanh.f32 %v280_v35  ;;  %v323_v38 = vadd.f32 %v321_v37, %v313_v36  ;;  %v354_v47 = vrot.slane %v280_v35, %v1609_v48 }
 0x489   :  { %1409 = vtanh.f32 %v323_v38 }
 0x494   :  { %v1408_v39 = vpop.eup %1407 }
 0x495   :  { %283 = vrot.lane.b32.xlu0 %v1408_v39, %s1508_s28 }
 0x496   :  { %v1410_v40 = vpop.eup %1409 }
 0x497   :  { %326 = vrot.lane.b32.xlu1 %v1410_v40, %s1508_s28 }
 0x507   :  { %v284_v41 = vpop.permute.xlu0 %283 }
 0x508   :  { %v286_v42 = vmul.f32 %v1404_v26, %v284_v41 }
 0x509   :  { %v327_v43 = vpop.permute.xlu1 %326 }
 0x50a   :  { %v294_v44 = vrot.slane %v286_v42, %v1609_v48  ;;  %v329_v45 = vmul.f32 %v1406_v29, %v327_v43 }
 0x50c   :  { %v1649_v46 = vrot.slane %v329_v45, %v1609_v48  ;;  %295 = vrot.lane.b32.xlu0 %v294_v44, %s1509_s29 }
 0x50e   :  { %343 = vrot.lane.b32.xlu1 %v1649_v46, %s1508_s28 }
 0x510   :  { %355 = vrot.lane.b32.xlu0 %v354_v47, %s1511_s30 }
 0x57e   :  { %v296_v49 = vpop.permute.xlu0 %295 }
 0x57f   :  { %299 = vst.msk [vmem:[#allocation2 + $0x2] sm:$0x3] %vm142_vm0, %v296_v49 }
 0x580   :  { %v344_v50 = vpop.permute.xlu1 %343 }
 0x581   :  { %v346_v51 = vsel %vm190_vm1, %v296_v49, %v344_v50  ;;  %v1350_v49 = vld [vmem:[%s1919_s0 + $0x10] sm:$0xf]  ;;  %v1349_v50 = vld [vmem:[%s1919_s0 + $0xc] sm:$0xf] }
 0x582   :  { %v359_v52 = vpack.c.bf16 %v346_v51, %v346_v51  ;;  %v356_v63 = vpop.permute.xlu0 %355  ;;  %v613_v51 = vrot.slane %v1350_v49, 2 }
 0x583   :  { %v358_v10 = vsel %vm190_vm1, %v356_v63, %v323_v38 }
 0x584   :  { %1345 = vmatmul.mubr.msk.bf16.vlgmr.msra.gmra.mxu0 %vm60_vm2, %v359_v52  ;;  %v421_v12 = vrot.slane %v358_v10, %v1609_v48 }
 0x585   :  { %682 = vmatpush1.bf16.msra.mxu0 %v1537_v2  ;;  %705 = vmatprep.mubr.bf16.mxu0 %v1507_v1 }
 0x586   :  { %683 = vmatprep.subr.bf16.mxu0 %v1543_v3 }
 0x589   :  { %684 = vmatpush1.bf16.msra.mxu0 %v1550_v4 }
 0x58a   :  { %685 = vmatprep.subr.bf16.mxu0 %v1557_v5 }
 0x58d   :  { %686 = vmatpush1.bf16.msra.mxu0 %v1564_v6 }
 0x58e   :  { %687 = vmatprep.subr.bf16.mxu0 %v1571_v7 }
 0x591   :  { %688 = vmatpush1.bf16.msra.mxu0 %v1578_v8 }
 0x592   :  { %987 = vmatprep.subr.bf16.mxu0 %v1530_v0 }
 0x644   :  { %v397_v57 = vpop.f32.mrf.mxu0 }
 0x645   :  { %v406_v58 = vadd.f32 %v1346_v55, %v397_v57 }
 0x646   :  { %v399_v59 = vpop.f32.mrf.mxu0 }
 0x647   :  { %1411 = vtanh.f32 %v406_v58  ;;  %v460_v60 = vadd.f32 %v458_v56, %v399_v59  ;;  %v407_v13 = vsub.f32 0.0, %v406_v58 }
 0x648   :  { %v401_v61 = vpop.f32.mrf.mxu0 }
 0x649   :  { %1413 = vtanh.f32 %v460_v60  ;;  %v461_v14 = vsub.f32 0.0, %v460_v60  ;;  %v408_v15 = vmul.f32 1.442695, %v407_v13 }
 0x64a   :  { %v402_v62 = vpop.f32.mrf.mxu0 }
 0x64b   :  { %v462_v16 = vmul.f32 1.442695, %v461_v14  ;;  %1415 = vpow2.f32 %v408_v15 }
 0x64d   :  { %1417 = vpow2.f32 %v462_v16 }
 0x654   :  { %v1412_v9 = vpop.eup %1411 }
 0x655   :  { %427 = vrot.lane.b32.xlu1 %v1412_v9, %s1508_s28 }
 0x656   :  { %v1414_v11 = vpop.eup %1413 }
 0x657   :  { %470 = vrot.lane.b32.xlu0 %v1414_v11, %s1508_s28 }
 0x658   :  { %v1416_v17 = vpop.eup %1415 }
 0x659   :  { %422 = vrot.lane.b32.xlu1 %v421_v12, %s1509_s29  ;;  %v410_v19 = vadd.f32 1.0, %v1416_v17 }
 0x65a   :  { %v1418_v18 = vpop.eup %1417 }
 0x65b   :  { %v464_v20 = vadd.f32 1.0, %v1418_v18  ;;  %1419 = vrcp.f32 %v410_v19 }
 0x65d   :  { %1421 = vrcp.f32 %v464_v20 }
 0x668   :  { %v1420_v21 = vpop.eup %1419 }
 0x66a   :  { %v1422_v24 = vpop.eup %1421 }
 0x66b   :  { %v468_v31 = vmul.f32 %v1422_v24, %v358_v10 }
 0x6c7   :  { %v428_v22 = vpop.permute.xlu1 %427 }
 0x6c8   :  { %v430_v23 = vmul.f32 %v1420_v21, %v428_v22 }
 0x6c9   :  { %v471_v25 = vpop.permute.xlu0 %470 }
 0x6ca   :  { %v473_v26 = vmul.f32 %v1422_v24, %v471_v25  ;;  %432 = vrot.lane.b32.xlu0 %v430_v23, %s1509_s29 }
 0x6cb   :  { %v423_v27 = vpop.permute.xlu1 %422 }
 0x6cc   :  { %475 = vrot.lane.b32.xlu1 %v473_v26, %s1509_s29  ;;  %v425_v28 = vmul.f32 %v1420_v21, %v423_v27 }
 0x73c   :  { %v433_v29 = vpop.permute.xlu0 %432 }
 0x73d   :  { %v435_v30 = vadd.f32 %v433_v29, %v425_v28 }
 0x73e   :  { %v476_v32 = vpop.permute.xlu1 %475 }
 0x73f   :  { %1423 = vtanh.f32 %v435_v30  ;;  %v478_v33 = vadd.f32 %v476_v32, %v468_v31  ;;  %v509_v42 = vrot.slane %v435_v30, %v1609_v48 }
 0x741   :  { %1425 = vtanh.f32 %v478_v33 }
 0x74c   :  { %v1424_v34 = vpop.eup %1423 }
 0x74d   :  { %438 = vrot.lane.b32.xlu0 %v1424_v34, %s1508_s28 }
 0x74e   :  { %v1426_v35 = vpop.eup %1425 }
 0x74f   :  { %481 = vrot.lane.b32.xlu1 %v1426_v35, %s1508_s28 }
 0x7bf   :  { %v439_v36 = vpop.permute.xlu0 %438 }
 0x7c0   :  { %v441_v37 = vmul.f32 %v1420_v21, %v439_v36 }
 0x7c1   :  { %v482_v38 = vpop.permute.xlu1 %481 }
 0x7c2   :  { %v449_v39 = vrot.slane %v441_v37, %v1609_v48  ;;  %v484_v40 = vmul.f32 %v1422_v24, %v482_v38 }
 0x7c4   :  { %v1685_v41 = vrot.slane %v484_v40, %v1609_v48  ;;  %450 = vrot.lane.b32.xlu0 %v449_v39, %s1509_s29 }
 0x7c6   :  { %498 = vrot.lane.b32.xlu1 %v1685_v41, %s1508_s28 }
 0x7c8   :  { %510 = vrot.lane.b32.xlu0 %v509_v42, %s1511_s30 }
 0x836   :  { %v451_v43 = vpop.permute.xlu0 %450 }
 0x837   :  { %454 = vst.msk [vmem:[#allocation2 + $0x4] sm:$0x3] %vm142_vm0, %v451_v43 }
 0x838   :  { %v499_v44 = vpop.permute.xlu1 %498 }
 0x839   :  { %v501_v45 = vsel %vm190_vm1, %v451_v43, %v499_v44  ;;  %v1353_v43 = vld [vmem:[%s1919_s0 + $0xc] sm:$0xf]  ;;  %v1352_v44 = vld [vmem:[%s1919_s0 + $0x10] sm:$0xf] }
 0x83a   :  { %v514_v47 = vpack.c.bf16 %v501_v45, %v501_v45  ;;  %v511_v59 = vpop.permute.xlu0 %510  ;;  %v766_v45 = vrot.slane %v1353_v43, 2 }
 0x83c   :  { %1348 = vmatmul.mubr.msk.bf16.vlgmr.msra.gmra.mxu1 %vm60_vm2, %v514_v47 }
 0x83d   :  { %835 = vmatpush1.bf16.msra.mxu1 %v1537_v2  ;;  %858 = vmatprep.mubr.bf16.mxu1 %v1507_v1 }
 0x83e   :  { %836 = vmatprep.subr.bf16.mxu1 %v1543_v3 }
 0x841   :  { %837 = vmatpush1.bf16.msra.mxu1 %v1550_v4 }
 0x842   :  { %838 = vmatprep.subr.bf16.mxu1 %v1557_v5 }
 0x845   :  { %839 = vmatpush1.bf16.msra.mxu1 %v1564_v6 }
 0x846   :  { %840 = vmatprep.subr.bf16.mxu1 %v1571_v7 }
 0x849   :  { %841 = vmatpush1.bf16.msra.mxu1 %v1578_v8 }
 0x84a   :  { %1140 = vmatprep.subr.bf16.mxu1 %v1530_v0  ;;  %v513_v0 = vsel %vm190_vm1, %v511_v59, %v478_v33 }
 0x84b   :  { %v576_v62 = vrot.slane %v513_v0, %v1609_v48 }
 0x8fc   :  { %v552_v52 = vpop.f32.mrf.mxu1 }
 0x8fd   :  { %v561_v53 = vadd.f32 %v1349_v50, %v552_v52 }
 0x8fe   :  { %v554_v55 = vpop.f32.mrf.mxu1 }
 0x8ff   :  { %1427 = vtanh.f32 %v561_v53  ;;  %v615_v56 = vadd.f32 %v613_v51, %v554_v55  ;;  %v562_v63 = vsub.f32 0.0, %v561_v53 }
 0x900   :  { %v556_v57 = vpop.f32.mrf.mxu1 }
 0x901   :  { %1429 = vtanh.f32 %v615_v56  ;;  %v616_v9 = vsub.f32 0.0, %v615_v56  ;;  %v563_v10 = vmul.f32 1.442695, %v562_v63 }
 0x902   :  { %v557_v58 = vpop.f32.mrf.mxu1 }
 0x903   :  { %v617_v11 = vmul.f32 1.442695, %v616_v9  ;;  %1431 = vpow2.f32 %v563_v10 }
 0x905   :  { %1433 = vpow2.f32 %v617_v11 }
 0x90c   :  { %v1428_v60 = vpop.eup %1427 }
 0x90d   :  { %582 = vrot.lane.b32.xlu1 %v1428_v60, %s1508_s28 }
 0x90e   :  { %v1430_v61 = vpop.eup %1429 }
 0x90f   :  { %625 = vrot.lane.b32.xlu0 %v1430_v61, %s1508_s28 }
 0x910   :  { %v1432_v12 = vpop.eup %1431 }
 0x911   :  { %577 = vrot.lane.b32.xlu1 %v576_v62, %s1509_s29  ;;  %v565_v14 = vadd.f32 1.0, %v1432_v12 }
 0x912   :  { %v1434_v13 = vpop.eup %1433 }
 0x913   :  { %v619_v15 = vadd.f32 1.0, %v1434_v13  ;;  %1435 = vrcp.f32 %v565_v14 }
 0x915   :  { %1437 = vrcp.f32 %v619_v15 }
 0x920   :  { %v1436_v16 = vpop.eup %1435 }
 0x922   :  { %v1438_v19 = vpop.eup %1437 }
 0x923   :  { %v623_v26 = vmul.f32 %v1438_v19, %v513_v0 }
 0x97f   :  { %v583_v17 = vpop.permute.xlu1 %582 }
 0x980   :  { %v585_v18 = vmul.f32 %v1436_v16, %v583_v17 }
 0x981   :  { %v626_v20 = vpop.permute.xlu0 %625 }
 0x982   :  { %v628_v21 = vmul.f32 %v1438_v19, %v626_v20  ;;  %587 = vrot.lane.b32.xlu0 %v585_v18, %s1509_s29 }
 0x983   :  { %v578_v22 = vpop.permute.xlu1 %577 }
 0x984   :  { %630 = vrot.lane.b32.xlu1 %v628_v21, %s1509_s29  ;;  %v580_v23 = vmul.f32 %v1436_v16, %v578_v22 }
 0x9f4   :  { %v588_v24 = vpop.permute.xlu0 %587 }
 0x9f5   :  { %v590_v25 = vadd.f32 %v588_v24, %v580_v23 }
 0x9f6   :  { %v631_v27 = vpop.permute.xlu1 %630 }
 0x9f7   :  { %1439 = vtanh.f32 %v590_v25  ;;  %v633_v28 = vadd.f32 %v631_v27, %v623_v26  ;;  %v664_v37 = vrot.slane %v590_v25, %v1609_v48 }
 0x9f9   :  { %1441 = vtanh.f32 %v633_v28 }
 0xa04   :  { %v1440_v29 = vpop.eup %1439 }
 0xa05   :  { %593 = vrot.lane.b32.xlu0 %v1440_v29, %s1508_s28 }
 0xa06   :  { %v1442_v30 = vpop.eup %1441 }
 0xa07   :  { %636 = vrot.lane.b32.xlu1 %v1442_v30, %s1508_s28 }
 0xa77   :  { %v594_v31 = vpop.permute.xlu0 %593 }
 0xa78   :  { %v596_v32 = vmul.f32 %v1436_v16, %v594_v31 }
 0xa79   :  { %v637_v33 = vpop.permute.xlu1 %636 }
 0xa7a   :  { %v604_v34 = vrot.slane %v596_v32, %v1609_v48  ;;  %v639_v35 = vmul.f32 %v1438_v19, %v637_v33 }
 0xa7c   :  { %v1721_v36 = vrot.slane %v639_v35, %v1609_v48  ;;  %605 = vrot.lane.b32.xlu0 %v604_v34, %s1509_s29 }
 0xa7e   :  { %653 = vrot.lane.b32.xlu1 %v1721_v36, %s1508_s28 }
 0xa80   :  { %665 = vrot.lane.b32.xlu0 %v664_v37, %s1511_s30 }
 0xaee   :  { %v606_v38 = vpop.permute.xlu0 %605 }
 0xaef   :  { %609 = vst.msk [vmem:[#allocation2 + $0x6] sm:$0x3] %vm142_vm0, %v606_v38 }
 0xaf0   :  { %v654_v39 = vpop.permute.xlu1 %653 }
 0xaf1   :  { %v656_v40 = vsel %vm190_vm1, %v606_v38, %v654_v39  ;;  %v1356_v39 = vld [vmem:[%s1919_s0 + $0x8] sm:$0xf] }
 0xaf2   :  { %v669_v42 = vpack.c.bf16 %v656_v40, %v656_v40  ;;  %v666_v55 = vpop.permute.xlu0 %665 }
 0xaf3   :  { %v668_v57 = vsel %vm190_vm1, %v666_v55, %v633_v28 }
 0xaf4   :  { %1351 = vmatmul.mubr.msk.bf16.vlgmr.msra.gmra.mxu0 %vm60_vm2, %v669_v42  ;;  %v730_v59 = vrot.slane %v668_v57, %v1609_v48 }
 0xaf5   :  { %988 = vmatpush1.bf16.msra.mxu0 %v1537_v2  ;;  %1011 = vmatprep.mubr.bf16.mxu0 %v1507_v1 }
 0xaf6   :  { %989 = vmatprep.subr.bf16.mxu0 %v1543_v3 }
 0xaf9   :  { %990 = vmatpush1.bf16.msra.mxu0 %v1550_v4 }
 0xafa   :  { %991 = vmatprep.subr.bf16.mxu0 %v1557_v5 }
 0xafd   :  { %992 = vmatpush1.bf16.msra.mxu0 %v1564_v6 }
 0xafe   :  { %993 = vmatprep.subr.bf16.mxu0 %v1571_v7 }
 0xb01   :  { %994 = vmatpush1.bf16.msra.mxu0 %v1578_v8 }
 0xbb4   :  { %v707_v47 = vpop.f32.mrf.mxu0 }
 0xbb5   :  { %v715_v49 = vadd.f32 %v1352_v44, %v707_v47 }
 0xbb6   :  { %v709_v50 = vpop.f32.mrf.mxu0 }
 0xbb7   :  { %1443 = vtanh.f32 %v715_v49  ;;  %v768_v51 = vadd.f32 %v766_v45, %v709_v50  ;;  %v716_v60 = vsub.f32 0.0, %v715_v49 }
 0xbb8   :  { %v711_v52 = vpop.f32.mrf.mxu0 }
 0xbb9   :  { %1445 = vtanh.f32 %v768_v51  ;;  %v769_v0 = vsub.f32 0.0, %v768_v51  ;;  %v717_v61 = vmul.f32 1.442695, %v716_v60 }
 0xbba   :  { %v712_v53 = vpop.f32.mrf.mxu0 }
 0xbbb   :  { %v770_v62 = vmul.f32 1.442695, %v769_v0  ;;  %1447 = vpow2.f32 %v717_v61 }
 0xbbd   :  { %1449 = vpow2.f32 %v770_v62 }
 0xbc4   :  { %v1444_v56 = vpop.eup %1443 }
 0xbc5   :  { %736 = vrot.lane.b32.xlu1 %v1444_v56, %s1508_s28 }
 0xbc6   :  { %v1446_v58 = vpop.eup %1445 }
 0xbc7   :  { %778 = vrot.lane.b32.xlu0 %v1446_v58, %s1508_s28 }
 0xbc8   :  { %v1448_v63 = vpop.eup %1447 }
 0xbc9   :  { %731 = vrot.lane.b32.xlu1 %v730_v59, %s1509_s29  ;;  %v719_v10 = vadd.f32 1.0, %v1448_v63 }
 0xbca   :  { %v1450_v9 = vpop.eup %1449 }
 0xbcb   :  { %v772_v11 = vadd.f32 1.0, %v1450_v9  ;;  %1451 = vrcp.f32 %v719_v10 }
 0xbcd   :  { %1453 = vrcp.f32 %v772_v11 }
 0xbd8   :  { %v1452_v12 = vpop.eup %1451 }
 0xbda   :  { %v1454_v15 = vpop.eup %1453 }
 0xbdb   :  { %v776_v22 = vmul.f32 %v1454_v15, %v668_v57 }
 0xc37   :  { %v737_v13 = vpop.permute.xlu1 %736 }
 0xc38   :  { %v739_v14 = vmul.f32 %v1452_v12, %v737_v13 }
 0xc39   :  { %v779_v16 = vpop.permute.xlu0 %778 }
 0xc3a   :  { %v781_v17 = vmul.f32 %v1454_v15, %v779_v16  ;;  %741 = vrot.lane.b32.xlu0 %v739_v14, %s1509_s29 }
 0xc3b   :  { %v732_v18 = vpop.permute.xlu1 %731 }
 0xc3c   :  { %783 = vrot.lane.b32.xlu1 %v781_v17, %s1509_s29  ;;  %v734_v19 = vmul.f32 %v1452_v12, %v732_v18 }
 0xcac   :  { %v742_v20 = vpop.permute.xlu0 %741 }
 0xcad   :  { %v744_v21 = vadd.f32 %v742_v20, %v734_v19 }
 0xcae   :  { %v784_v23 = vpop.permute.xlu1 %783 }
 0xcaf   :  { %1455 = vtanh.f32 %v744_v21  ;;  %v786_v24 = vadd.f32 %v784_v23, %v776_v22  ;;  %v817_v33 = vrot.slane %v744_v21, %v1609_v48 }
 0xcb1   :  { %1457 = vtanh.f32 %v786_v24 }
 0xcbc   :  { %v1456_v25 = vpop.eup %1455 }
 0xcbd   :  { %747 = vrot.lane.b32.xlu0 %v1456_v25, %s1508_s28 }
 0xcbe   :  { %v1458_v26 = vpop.eup %1457 }
 0xcbf   :  { %789 = vrot.lane.b32.xlu1 %v1458_v26, %s1508_s28 }
 0xd2f   :  { %v748_v27 = vpop.permute.xlu0 %747 }
 0xd30   :  { %v750_v28 = vmul.f32 %v1452_v12, %v748_v27  ;;  %v1359_v27 = vld [vmem:[%s1919_s0 + $0x4] sm:$0xf] }
 0xd31   :  { %v790_v29 = vpop.permute.xlu1 %789 }
 0xd32   :  { %v758_v30 = vrot.slane %v750_v28, %v1609_v48  ;;  %v792_v31 = vmul.f32 %v1454_v15, %v790_v29  ;;  %v1358_v28 = vld [vmem:[%s1919_s0 + $0x18] sm:$0xf]  ;;  %v1072_v29 = vrot.slane %v1359_v27, 2 }
 0xd34   :  { %v1756_v32 = vrot.slane %v792_v31, %v1609_v48  ;;  %759 = vrot.lane.b32.xlu0 %v758_v30, %s1509_s29 }
 0xd36   :  { %806 = vrot.lane.b32.xlu1 %v1756_v32, %s1508_s28 }
 0xd38   :  { %818 = vrot.lane.b32.xlu0 %v817_v33, %s1511_s30 }
 0xda6   :  { %v760_v34 = vpop.permute.xlu0 %759 }
 0xda7   :  { %763 = vst.msk [vmem:[#allocation2 + $0x8] sm:$0x3] %vm142_vm0, %v760_v34 }
 0xda8   :  { %v807_v35 = vpop.permute.xlu1 %806 }
 0xda9   :  { %v809_v37 = vsel %vm190_vm1, %v760_v34, %v807_v35 }
 0xdaa   :  { %v822_v38 = vpack.c.bf16 %v809_v37, %v809_v37 }
 0xdac   :  { %1354 = vmatmul.mubr.msk.bf16.vlgmr.msra.gmra.mxu1 %vm60_vm2, %v822_v38 }
 0xdad   :  { %1141 = vmatpush1.bf16.msra.mxu1 %v1537_v2  ;;  %1164 = vmatprep.mubr.bf16.mxu1 %v1507_v1  ;;  %v1355_v1 = vld [vmem:[%s1919_s0 + $0x14] sm:$0xf]  ;;  %v919_v2 = vrot.slane %v1356_v39, 2 }
 0xdae   :  { %1142 = vmatprep.subr.bf16.mxu1 %v1543_v3 }
 0xdb1   :  { %1143 = vmatpush1.bf16.msra.mxu1 %v1550_v4 }
 0xdb2   :  { %1144 = vmatprep.subr.bf16.mxu1 %v1557_v5 }
 0xdb5   :  { %1145 = vmatpush1.bf16.msra.mxu1 %v1564_v6 }
 0xdb6   :  { %1146 = vmatprep.subr.bf16.mxu1 %v1571_v7  ;;  %v819_v7 = vpop.permute.xlu0 %818 }
 0xdb9   :  { %1147 = vmatpush1.bf16.msra.mxu1 %v1578_v8  ;;  %v821_v8 = vsel %vm190_vm1, %v819_v7, %v786_v24 }
 0xdba   :  { %v883_v45 = vrot.slane %v821_v8, %v1609_v48 }
 0xe6c   :  { %v860_v3 = vpop.f32.mrf.mxu1 }
 0xe6d   :  { %v868_v40 = vadd.f32 %v1355_v1, %v860_v3 }
 0xe6e   :  { %v862_v4 = vpop.f32.mrf.mxu1 }
 0xe6f   :  { %1459 = vtanh.f32 %v868_v40  ;;  %v921_v5 = vadd.f32 %v919_v2, %v862_v4  ;;  %v869_v47 = vsub.f32 0.0, %v868_v40 }
 0xe70   :  { %v864_v42 = vpop.f32.mrf.mxu1 }
 0xe71   :  { %1461 = vtanh.f32 %v921_v5  ;;  %v922_v49 = vsub.f32 0.0, %v921_v5  ;;  %v870_v50 = vmul.f32 1.442695, %v869_v47 }
 0xe72   :  { %v865_v6 = vpop.f32.mrf.mxu1 }
 0xe73   :  { %v923_v51 = vmul.f32 1.442695, %v922_v49  ;;  %1463 = vpow2.f32 %v870_v50 }
 0xe75   :  { %1465 = vpow2.f32 %v923_v51 }
 0xe7c   :  { %v1460_v43 = vpop.eup %1459 }
 0xe7d   :  { %889 = vrot.lane.b32.xlu1 %v1460_v43, %s1508_s28 }
 0xe7e   :  { %v1462_v44 = vpop.eup %1461 }
 0xe7f   :  { %931 = vrot.lane.b32.xlu0 %v1462_v44, %s1508_s28 }
 0xe80   :  { %v1464_v52 = vpop.eup %1463 }
 0xe81   :  { %884 = vrot.lane.b32.xlu1 %v883_v45, %s1509_s29  ;;  %v872_v55 = vadd.f32 1.0, %v1464_v52 }
 0xe82   :  { %v1466_v53 = vpop.eup %1465 }
 0xe83   :  { %v925_v56 = vadd.f32 1.0, %v1466_v53  ;;  %1467 = vrcp.f32 %v872_v55 }
 0xe85   :  { %1469 = vrcp.f32 %v925_v56 }
 0xe90   :  { %v1468_v57 = vpop.eup %1467 }
 0xe92   :  { %v1470_v60 = vpop.eup %1469 }
 0xe93   :  { %v929_v11 = vmul.f32 %v1470_v60, %v821_v8 }
 0xeef   :  { %v890_v58 = vpop.permute.xlu1 %889 }
 0xef0   :  { %v892_v59 = vmul.f32 %v1468_v57, %v890_v58 }
 0xef1   :  { %v932_v0 = vpop.permute.xlu0 %931 }
 0xef2   :  { %v934_v61 = vmul.f32 %v1470_v60, %v932_v0  ;;  %894 = vrot.lane.b32.xlu0 %v892_v59, %s1509_s29 }
 0xef3   :  { %v885_v62 = vpop.permute.xlu1 %884 }
 0xef4   :  { %936 = vrot.lane.b32.xlu1 %v934_v61, %s1509_s29  ;;  %v887_v63 = vmul.f32 %v1468_v57, %v885_v62 }
 0xf64   :  { %v895_v9 = vpop.permute.xlu0 %894 }
 0xf65   :  { %v897_v10 = vadd.f32 %v895_v9, %v887_v63 }
 0xf66   :  { %v937_v12 = vpop.permute.xlu1 %936 }
 0xf67   :  { %1471 = vtanh.f32 %v897_v10  ;;  %v939_v13 = vadd.f32 %v937_v12, %v929_v11  ;;  %v970_v22 = vrot.slane %v897_v10, %v1609_v48 }
 0xf69   :  { %1473 = vtanh.f32 %v939_v13 }
 0xf74   :  { %v1472_v14 = vpop.eup %1471 }
 0xf75   :  { %900 = vrot.lane.b32.xlu0 %v1472_v14, %s1508_s28 }
 0xf76   :  { %v1474_v15 = vpop.eup %1473 }
 0xf77   :  { %942 = vrot.lane.b32.xlu1 %v1474_v15, %s1508_s28 }
 0xfe7   :  { %v901_v16 = vpop.permute.xlu0 %900 }
 0xfe8   :  { %v903_v17 = vmul.f32 %v1468_v57, %v901_v16 }
 0xfe9   :  { %v943_v18 = vpop.permute.xlu1 %942 }
 0xfea   :  { %v911_v19 = vrot.slane %v903_v17, %v1609_v48  ;;  %v945_v20 = vmul.f32 %v1470_v60, %v943_v18  ;;  %v1223_v17 = vld [vmem:[%s1919_s0] sm:$0xf] }
 0xfeb   :  { %v1225_v18 = vrot.slane %v1223_v17, 2 }
 0xfec   :  { %v1791_v21 = vrot.slane %v945_v20, %v1609_v48  ;;  %912 = vrot.lane.b32.xlu0 %v911_v19, %s1509_s29  ;;  %v1361_v20 = vld [vmem:[%s1919_s0 + $0x1c] sm:$0xf] }
 0xfee   :  { %959 = vrot.lane.b32.xlu1 %v1791_v21, %s1508_s28 }
 0xff0   :  { %971 = vrot.lane.b32.xlu0 %v970_v22, %s1511_s30 }
0x105e   :  { %v913_v23 = vpop.permute.xlu0 %912 }
0x105f   :  { %916 = vst.msk [vmem:[#allocation2 + $0xa] sm:$0x3] %vm142_vm0, %v913_v23 }
0x1060   :  { %v960_v24 = vpop.permute.xlu1 %959 }
0x1061   :  { %v962_v25 = vsel %vm190_vm1, %v913_v23, %v960_v24 }
0x1062   :  { %v975_v26 = vpack.c.bf16 %v962_v25, %v962_v25  ;;  %v972_v38 = vpop.permute.xlu0 %971 }
0x1063   :  { %v974_v1 = vsel %vm190_vm1, %v972_v38, %v939_v13 }
0x1064   :  { %1357 = vmatmul.mubr.msk.bf16.vlgmr.msra.gmra.mxu0 %vm60_vm2, %v975_v26  ;;  %v1036_v3 = vrot.slane %v974_v1, %v1609_v48 }
0x1124   :  { %v1013_v30 = vpop.f32.mrf.mxu0 }
0x1125   :  { %v1021_v31 = vadd.f32 %v1358_v28, %v1013_v30 }
0x1126   :  { %v1015_v33 = vpop.f32.mrf.mxu0 }
0x1127   :  { %1475 = vtanh.f32 %v1021_v31  ;;  %v1074_v34 = vadd.f32 %v1072_v29, %v1015_v33  ;;  %v1022_v40 = vsub.f32 0.0, %v1021_v31 }
0x1128   :  { %v1017_v35 = vpop.f32.mrf.mxu0 }
0x1129   :  { %1477 = vtanh.f32 %v1074_v34  ;;  %v1075_v4 = vsub.f32 0.0, %v1074_v34  ;;  %v1023_v5 = vmul.f32 1.442695, %v1022_v40 }
0x112a   :  { %v1018_v37 = vpop.f32.mrf.mxu0 }
0x112b   :  { %v1076_v42 = vmul.f32 1.442695, %v1075_v4  ;;  %1479 = vpow2.f32 %v1023_v5 }
0x112d   :  { %1481 = vpow2.f32 %v1076_v42 }
0x1134   :  { %v1476_v39 = vpop.eup %1475 }
0x1135   :  { %1042 = vrot.lane.b32.xlu1 %v1476_v39, %s1508_s28 }
0x1136   :  { %v1478_v2 = vpop.eup %1477 }
0x1137   :  { %1084 = vrot.lane.b32.xlu0 %v1478_v2, %s1508_s28 }
0x1138   :  { %v1480_v6 = vpop.eup %1479 }
0x1139   :  { %1037 = vrot.lane.b32.xlu1 %v1036_v3, %s1509_s29  ;;  %v1025_v43 = vadd.f32 1.0, %v1480_v6 }
0x113a   :  { %v1482_v7 = vpop.eup %1481 }
0x113b   :  { %v1078_v8 = vadd.f32 1.0, %v1482_v7  ;;  %1483 = vrcp.f32 %v1025_v43 }
0x113d   :  { %1485 = vrcp.f32 %v1078_v8 }
0x1148   :  { %v1484_v44 = vpop.eup %1483 }
0x114a   :  { %v1486_v49 = vpop.eup %1485 }
0x114b   :  { %v1082_v57 = vmul.f32 %v1486_v49, %v974_v1 }
0x11a7   :  { %v1043_v45 = vpop.permute.xlu1 %1042 }
0x11a8   :  { %v1045_v47 = vmul.f32 %v1484_v44, %v1043_v45 }
0x11a9   :  { %v1085_v50 = vpop.permute.xlu0 %1084 }
0x11aa   :  { %v1087_v51 = vmul.f32 %v1486_v49, %v1085_v50  ;;  %1047 = vrot.lane.b32.xlu0 %v1045_v47, %s1509_s29 }
0x11ab   :  { %v1038_v52 = vpop.permute.xlu1 %1037 }
0x11ac   :  { %1089 = vrot.lane.b32.xlu1 %v1087_v51, %s1509_s29  ;;  %v1040_v53 = vmul.f32 %v1484_v44, %v1038_v52 }
0x121c   :  { %v1048_v55 = vpop.permute.xlu0 %1047 }
0x121d   :  { %v1050_v56 = vadd.f32 %v1048_v55, %v1040_v53 }
0x121e   :  { %v1090_v58 = vpop.permute.xlu1 %1089 }
0x121f   :  { %1487 = vtanh.f32 %v1050_v56  ;;  %v1092_v59 = vadd.f32 %v1090_v58, %v1082_v57  ;;  %v1123_v12 = vrot.slane %v1050_v56, %v1609_v48 }
0x1221   :  { %1489 = vtanh.f32 %v1092_v59 }
0x122c   :  { %v1488_v60 = vpop.eup %1487 }
0x122d   :  { %1053 = vrot.lane.b32.xlu0 %v1488_v60, %s1508_s28 }
0x122e   :  { %v1490_v0 = vpop.eup %1489 }
0x122f   :  { %1095 = vrot.lane.b32.xlu1 %v1490_v0, %s1508_s28 }
0x129f   :  { %v1054_v61 = vpop.permute.xlu0 %1053 }
0x12a0   :  { %v1056_v62 = vmul.f32 %v1484_v44, %v1054_v61 }
0x12a1   :  { %v1096_v63 = vpop.permute.xlu1 %1095 }
0x12a2   :  { %v1064_v9 = vrot.slane %v1056_v62, %v1609_v48  ;;  %v1098_v10 = vmul.f32 %v1486_v49, %v1096_v63 }
0x12a4   :  { %v1818_v11 = vrot.slane %v1098_v10, %v1609_v48  ;;  %1065 = vrot.lane.b32.xlu0 %v1064_v9, %s1509_s29 }
0x12a6   :  { %1112 = vrot.lane.b32.xlu1 %v1818_v11, %s1508_s28 }
0x12aa   :  { %1124 = vrot.lane.b32.xlu1 %v1123_v12, %s1511_s30 }
0x1316   :  { %v1066_v13 = vpop.permute.xlu0 %1065 }
0x1317   :  { %1069 = vst.msk [vmem:[#allocation2 + $0xc] sm:$0x3] %vm142_vm0, %v1066_v13 }
0x1318   :  { %v1113_v14 = vpop.permute.xlu1 %1112 }
0x1319   :  { %v1115_v15 = vsel %vm190_vm1, %v1066_v13, %v1113_v14  ;;  %v1266_v13 = vld [vmem:[#allocation2 + $0x4] sm:$0x3] }
0x131a   :  { %v1128_v16 = vpack.c.bf16 %v1115_v15, %v1115_v15  ;;  %v1265_v15 = vld [vmem:[#allocation2 + $0x2] sm:$0x3] }
0x131c   :  { %1360 = vmatmul.mubr.msk.bf16.vlgmr.msra.gmra.mxu1 %vm60_vm2, %v1128_v16  ;;  %v1125_v28 = vpop.permute.xlu1 %1124 }
0x131d   :  { %v1127_v30 = vsel %vm190_vm1, %v1125_v28, %v1092_v59 }
0x131e   :  { %v1189_v31 = vrot.slane %v1127_v30, %v1609_v48 }
0x13dc   :  { %v1166_v19 = vpop.f32.mrf.mxu1 }
0x13dd   :  { %v1174_v25 = vadd.f32 %v1361_v20, %v1166_v19  ;;  %v1268_v19 = vld [vmem:[#allocation2 + $0x8] sm:$0x3] }
0x13de   :  { %v1168_v22 = vpop.f32.mrf.mxu1 }
0x13df   :  { %v1227_v23 = vadd.f32 %v1225_v18, %v1168_v22  ;;  %v1175_v34 = vsub.f32 0.0, %v1174_v25  ;;  %v1267_v22 = vld [vmem:[#allocation2 + $0x6] sm:$0x3] }
0x13e0   :  { %v1170_v24 = vpop.f32.mrf.mxu1 }
0x13e1   :  { %1491 = vtanh.f32 %v1227_v23  ;;  %v1228_v33 = vsub.f32 0.0, %v1227_v23  ;;  %v1176_v37 = vmul.f32 1.442695, %v1175_v34 }
0x13e2   :  { %v1171_v26 = vpop.f32.mrf.mxu1  ;;  %1493 = vtanh.f32 %v1174_v25 }
0x13e3   :  { %v1229_v35 = vmul.f32 1.442695, %v1228_v33  ;;  %v1269_v26 = vld [vmem:[#allocation2 + $0xa] sm:$0x3]  ;;  %v1264_v33 = vld [vmem:[#allocation2] sm:$0x3] }
0x13e5   :  { %1495 = vpow2.f32 %v1229_v35 }
0x13e6   :  { %1497 = vpow2.f32 %v1176_v37 }
0x13ee   :  { %v1492_v27 = vpop.eup %1491 }
0x13ef   :  { %1237 = vrot.lane.b32.xlu0 %v1492_v27, %s1508_s28  ;;  %v1494_v29 = vpop.eup %1493 }
0x13f2   :  { %v1496_v38 = vpop.eup %1495 }
0x13f3   :  { %1195 = vrot.lane.b32.xlu0 %v1494_v29, %s1508_s28  ;;  %v1231_v39 = vadd.f32 1.0, %v1496_v38  ;;  %v1498_v1 = vpop.eup %1497  ;;  %v1270_v38 = vld [vmem:[#allocation2 + $0xc] sm:$0x3] }
0x13f4   :  { %v1178_v2 = vadd.f32 1.0, %v1498_v1 }
0x13f5   :  { %1499 = vrcp.f32 %v1231_v39 }
0x13f6   :  { %1501 = vrcp.f32 %v1178_v2 }
0x13f7   :  { %1190 = vrot.lane.b32.xlu0 %v1189_v31, %s1509_s29 }
0x1402   :  { %v1500_v3 = vpop.eup %1499 }
0x1403   :  { %v1502_v5 = vpop.eup %1501  ;;  %v1235_v7 = vmul.f32 %v1500_v3, %v1127_v30 }
0x1461   :  { %v1238_v40 = vpop.permute.xlu0 %1237 }
0x1462   :  { %v1240_v4 = vmul.f32 %v1500_v3, %v1238_v40 }
0x1464   :  { %1242 = vrot.lane.b32.xlu1 %v1240_v4, %s1509_s29 }
0x1465   :  { %v1196_v42 = vpop.permute.xlu0 %1195 }
0x1466   :  { %v1198_v6 = vmul.f32 %v1502_v5, %v1196_v42 }
0x1468   :  { %1200 = vrot.lane.b32.xlu1 %v1198_v6, %s1509_s29 }
0x1469   :  { %v1191_v43 = vpop.permute.xlu0 %1190 }
0x146a   :  { %v1193_v45 = vmul.f32 %v1502_v5, %v1191_v43 }
0x14d6   :  { %v1243_v8 = vpop.permute.xlu1 %1242 }
0x14d7   :  { %v1245_v44 = vadd.f32 %v1243_v8, %v1235_v7 }
0x14d9   :  { %1503 = vtanh.f32 %v1245_v44 }
0x14da   :  { %v1201_v47 = vpop.permute.xlu1 %1200 }
0x14db   :  { %v1203_v49 = vadd.f32 %v1201_v47, %v1193_v45 }
0x14dd   :  { %1505 = vtanh.f32 %v1203_v49 }
0x14e6   :  { %v1504_v50 = vpop.eup %1503 }
0x14e7   :  { %1248 = vrot.lane.b32.xlu0 %v1504_v50, %s1508_s28 }
0x14ea   :  { %v1506_v51 = vpop.eup %1505 }
0x14eb   :  { %1206 = vrot.lane.b32.xlu1 %v1506_v51, %s1508_s28  ;;  %182 = vrot.lane.b32.xlu0 %v1615_v54, %s1509_s29 }
0x14ef   :  { %338 = vrot.lane.b32.xlu1 %v1649_v46, %s1509_s29  ;;  %493 = vrot.lane.b32.xlu0 %v1685_v41, %s1509_s29 }
0x14f3   :  { %648 = vrot.lane.b32.xlu1 %v1721_v36, %s1509_s29  ;;  %801 = vrot.lane.b32.xlu0 %v1756_v32, %s1509_s29 }
0x14f7   :  { %954 = vrot.lane.b32.xlu1 %v1791_v21, %s1509_s29  ;;  %1107 = vrot.lane.b32.xlu0 %v1818_v11, %s1509_s29 }
0x1559   :  { %v1249_v52 = vpop.permute.xlu0 %1248 }
0x155a   :  { %v1251_v54 = vmul.f32 %v1500_v3, %v1249_v52 }
0x155c   :  { %v1259_v53 = vrot.slane %v1251_v54, %v1609_v48 }
0x155d   :  { %v1207_v46 = vpop.permute.xlu1 %1206  ;;  %v183_v55 = vpop.permute.xlu0 %182 }
0x155e   :  { %v1209_v56 = vmul.f32 %v1502_v5, %v1207_v46  ;;  %186 = vst.msk [vmem:[#allocation3 + $0xe] sm:$0x3] %vm142_vm0, %v183_v55  ;;  %1260 = vrot.lane.b32.xlu1 %v1259_v53, %s1509_s29 }
0x1560   :  { %v1217_v41 = vrot.slane %v1209_v56, %v1609_v48 }
0x1561   :  { %v339_v36 = vpop.permute.xlu1 %338  ;;  %v494_v32 = vpop.permute.xlu0 %493 }
0x1562   :  { %342 = vst.msk [vmem:[#allocation3 + $0xc] sm:$0x3] %vm142_vm0, %v339_v36  ;;  %497 = vst.msk [vmem:[#allocation3 + $0xa] sm:$0x3] %vm142_vm0, %v494_v32  ;;  %1218 = vrot.lane.b32.xlu0 %v1217_v41, %s1509_s29 }
0x1565   :  { %v649_v21 = vpop.permute.xlu1 %648  ;;  %v802_v57 = vpop.permute.xlu0 %801  ;;  %v1279_v63 = vld [vmem:[#allocation3 + $0xe] sm:$0x3] }
0x1566   :  { %652 = vst.msk [vmem:[#allocation3 + $0x8] sm:$0x3] %vm142_vm0, %v649_v21  ;;  %805 = vst.msk [vmem:[#allocation3 + $0x6] sm:$0x3] %vm142_vm0, %v802_v57 }
0x1569   :  { %v955_v58 = vpop.permute.xlu1 %954  ;;  %v1108_v59 = vpop.permute.xlu0 %1107  ;;  %v1277_v62 = vld [vmem:[#allocation3 + $0xa] sm:$0x3]  ;;  %v1278_v12 = vld [vmem:[#allocation3 + $0xc] sm:$0x3] }
0x156a   :  { %958 = vst.msk [vmem:[#allocation3 + $0x4] sm:$0x3] %vm142_vm0, %v955_v58  ;;  %1111 = vst.msk [vmem:[#allocation3 + $0x2] sm:$0x3] %vm142_vm0, %v1108_v59 }
0x156d   :  { %v1276_v0 = vld [vmem:[#allocation3 + $0x8] sm:$0x3]  ;;  %v1275_v61 = vld [vmem:[#allocation3 + $0x6] sm:$0x3] }
0x1571   :  { %v1274_v48 = vld [vmem:[#allocation3 + $0x4] sm:$0x3]  ;;  %v1273_v60 = vld [vmem:[#allocation3 + $0x2] sm:$0x3] }
0x1572   :  { %1292 = vrot.lane.b32.xlu1 %v1274_v48, %s1509_s29  ;;  %1290 = vrot.lane.b32.xlu0 %v1273_v60, %s1509_s29 }
0x1576   :  { %1296 = vrot.lane.b32.xlu1 %v1276_v0, %s1509_s29  ;;  %1294 = vrot.lane.b32.xlu0 %v1275_v61, %s1509_s29 }
0x157a   :  { %1298 = vrot.lane.b32.xlu0 %v1277_v62, %s1509_s29 }
0x157e   :  { %1302 = vrot.lane.b32.xlu0 %v1279_v63, %s1509_s29 }
0x15d0   :  { %v1261_v9 = vpop.permute.xlu1 %1260 }
0x15d1   :  { %1263 = vst.msk [vmem:[#allocation3] sm:$0x3] %vm142_vm0, %v1261_v9 }
0x15d4   :  { %v1219_v10 = vpop.permute.xlu0 %1218 }
0x15d5   :  { %1222 = vst.msk [vmem:[#allocation2 + $0xe] sm:$0x3] %vm142_vm0, %v1219_v10 }
0x15d8   :  { %v1272_v11 = vld [vmem:[#allocation3] sm:$0x3] }
0x15d9   :  { %1288 = vrot.lane.b32.xlu1 %v1272_v11, %s1509_s29 }
0x15dc   :  { %v1271_v29 = vld [vmem:[#allocation2 + $0xe] sm:$0x3] }
0x15dd   :  { %1300 = vrot.lane.b32.xlu1 %v1278_v12, %s1509_s29 }
0x15e4   :  { %v1293_v14 = vpop.permute.xlu1 %1292  ;;  %v1291_v16 = vpop.permute.xlu0 %1290 }
0x15e5   :  { %v1314_v17 = vsel %vm190_vm1, %v1266_v13, %v1293_v14  ;;  %v1313_v18 = vsel %vm190_vm1, %v1265_v15, %v1291_v16 }
0x15e6   :  { %1323 = vst.msk [vmem:[%s1920_s2 + $0x4] sm:$0x3] %vm1320_vm3, %v1314_v17  ;;  %1322 = vst.msk [vmem:[%s1920_s2 + $0x2] sm:$0x3] %vm1320_vm3, %v1313_v18 }
0x15e8   :  { %v1297_v20 = vpop.permute.xlu1 %1296  ;;  %v1295_v23 = vpop.permute.xlu0 %1294 }
0x15e9   :  { %v1316_v24 = vsel %vm190_vm1, %v1268_v19, %v1297_v20  ;;  %v1315_v25 = vsel %vm190_vm1, %v1267_v22, %v1295_v23 }
0x15ea   :  { %1325 = vst.msk [vmem:[%s1920_s2 + $0x8] sm:$0x3] %vm1320_vm3, %v1316_v24  ;;  %1324 = vst.msk [vmem:[%s1920_s2 + $0x6] sm:$0x3] %vm1320_vm3, %v1315_v25 }
0x15ec   :  { %v1299_v27 = vpop.permute.xlu0 %1298 }
0x15ed   :  { %v1317_v28 = vsel %vm190_vm1, %v1269_v26, %v1299_v27 }
0x15ee   :  { %1326 = vst.msk [vmem:[%s1920_s2 + $0xa] sm:$0x3] %vm1320_vm3, %v1317_v28 }
0x15f0   :  { %v1303_v30 = vpop.permute.xlu0 %1302 }
0x15f1   :  { %v1319_v31 = vsel %vm190_vm1, %v1271_v29, %v1303_v30 }
0x15f2   :  { %1328 = vst.msk [vmem:[%s1920_s2 + $0xe] sm:$0x3] %vm1320_vm3, %v1319_v31 }
0x164b   :  { %v1289_v34 = vpop.permute.xlu1 %1288 }
0x164c   :  { %v1312_v35 = vsel %vm190_vm1, %v1264_v33, %v1289_v34 }
0x164d   :  { %1321 = vst.msk [vmem:[%s1920_s2] sm:$0x3] %vm1320_vm3, %v1312_v35 }
0x164f   :  { %v1301_v37 = vpop.permute.xlu1 %1300 }
0x1650   :  { %v1318_v39 = vsel %vm190_vm1, %v1270_v38, %v1301_v37 }
0x1651   :  { %1327 = vst.msk [vmem:[%s1920_s2 + $0xc] sm:$0x3] %vm1320_vm3, %v1318_v39 }

</bundles_post_ra>
